<compile_context>
chip_gen: v6e
topology: v6e:2x2x1
jax: 0.10.0
libtpu: 0.0.40
codegen_flags: <defaults>
</compile_context>

<pallas_src>
import functools

import jax
import jax.numpy as jnp
from jax.experimental import pallas as pl
from jax.experimental.pallas import tpu as pltpu


def _round_up(x, m):
    return (x + m - 1) // m * m


def _default_bf16_taps():
    """bf16 tap math only pays off on chips with a bf16 VPU (v6e / v7x)."""
    try:
        kind = jax.devices()[0].device_kind.lower()
    except Exception:
        return True
    return not any(tag in kind for tag in ("v2", "v3", "v4", "v5"))


def _vmem_limit_bytes():
    """Scoped-VMEM cap with headroom (v7x only has 64 MiB per TensorCore)."""
    try:
        cap = pltpu.get_tpu_info().vmem_capacity_bytes
        return int(min(cap * 3 // 4, 100 * 1024 * 1024))
    except Exception:
        return 48 * 1024 * 1024


def _conv_module_kernel(
    x_hbm, w1o_ref, w1g_ref, b1o_ref, b1g_ref, wdw_ref, bdw_ref, w2_ref,
    b2_ref, o_ref, xwin, zbuf, sem, *, seq_len, l_tile, halo, ksize, n_tiles,
    tap_group):
    """One (batch, L-tile) grid step.

    x_hbm : (B, L_padded, Dp) bf16 in HBM (pl.ANY); windows DMA'd manually
    w1o/w1g: (Dp, Cp) bf16     b1o/b1g: (1, Cp) f32
    wdw   : (K, Cp) tap dtype  bdw    : (1, Cp) f32
    w2    : (Cp, Dp) bf16      b2     : (1, Dp) f32
    o_ref : (l_tile, Dp)
    xwin  : VMEM (2, window, Dp) bf16   (double-buffered x window)
    zbuf  : VMEM (window, Cp) tap dtype (post-GLU activations)
    sem   : DMA semaphores, shape (2,)
    """
    b = pl.program_id(0)
    t = pl.program_id(1)
    pad = ksize // 2
    window = l_tile + 2 * halo
    slot = t % 2

    def start_window_copy(tile_idx, dst_slot):
        row0 = pl.multiple_of(tile_idx * l_tile, 16)
        pltpu.make_async_copy(
            x_hbm.at[b, pl.ds(row0, window), :], xwin.at[dst_slot],
            sem.at[dst_slot]).start()

    # Prime the double buffer at the start of every batch row, then keep one
    # window in flight: tile t's copy was issued at step t-1 (or just above
    # for t == 0); issue tile t+1 before computing so its DMA hides behind
    # this tile's compute.
    @pl.when(t == 0)
    def _():
        start_window_copy(0, 0)

    @pl.when(t + 1 < n_tiles)
    def _():
        start_window_copy(t + 1, 1 - slot)

    pltpu.make_async_copy(
        x_hbm.at[b, pl.ds(0, window), :], xwin.at[slot], sem.at[slot]).wait()

    # --- pointwise conv D -> 4D as the two GLU halves (bf16 MXU, f32 acc) ---
    xw = xwin[slot]                                                   # (W, Dp) bf16
    y_out = jnp.dot(xw, w1o_ref[...],
                    preferred_element_type=jnp.float32) + b1o_ref[...]
    y_gate = jnp.dot(xw, w1g_ref[...],
                     preferred_element_type=jnp.float32) + b1g_ref[...]
    z = y_out * jax.nn.sigmoid(y_gate)                                # (W, Cp) f32

    # The depthwise conv's 'same' padding zero-pads its *input* (post-GLU),
    # so rows outside [0, seq_len) must be zero (GLU of zero-padded x is
    # bias-driven, not zero).  Only boundary tiles pay for the mask.
    row0 = t * l_tile
    needs_mask = jnp.logical_or(row0 < halo, row0 + l_tile + halo > seq_len)

    @pl.when(needs_mask)
    def _():
        r = jax.lax.broadcasted_iota(jnp.int32, (window, 1), 0)
        g = row0 - halo + r                                           # global row
        valid = jnp.logical_and(g >= 0, g < seq_len)
        zbuf[...] = jnp.where(valid, z, 0.0).astype(zbuf.dtype)

    @pl.when(jnp.logical_not(needs_mask))
    def _():
        zbuf[...] = z.astype(zbuf.dtype)

    # --- depthwise conv: K static tap slices, grouped accumulation.
    # bf16 path (v6e/v7x): products and small tap groups stay bf16 (packed
    # VPU, half the vld bytes) and each group is widened into the f32
    # accumulator.  f32 path (v5e): tap_group == K, plain f32 accumulate.
    cpad = zbuf.shape[1]
    acc = jnp.zeros((l_tile, cpad), jnp.float32)
    for g0 in range(0, ksize, tap_group):
        g1 = min(g0 + tap_group, ksize)
        part = zbuf[pl.ds(halo - pad + g0, l_tile), :] * wdw_ref[g0]
        for k in range(g0 + 1, g1):
            part = part + zbuf[pl.ds(halo - pad + k, l_tile), :] * wdw_ref[k]
        acc = acc + part.astype(jnp.float32)
    acc = acc + bdw_ref[...]

    # --- SiLU ---
    a = acc * jax.nn.sigmoid(acc)

    # --- pointwise conv 2D -> D (bf16 MXU, f32 acc) ---
    out = jnp.dot(a.astype(jnp.bfloat16), w2_ref[...],
                  preferred_element_type=jnp.float32) + b2_ref[...]
    o_ref[...] = out.astype(o_ref.dtype)


def conformer_conv_module(x, w1, b1, wdw, bdw, w2, b2, *, l_tile=512,
                          bf16_taps=None, tap_group=4):
    """ConformerConvModule forward.

    x  : (B, L, D)
    w1 : (D, 2*inner)  b1 : (1, 2*inner)     [Conv1d(D, 2*inner, 1)]
    wdw: (K, inner)    bdw: (1, inner)       [depthwise Conv1d(inner, k=K)]
    w2 : (inner, D)    b2 : (1, D)           [Conv1d(inner, D, 1)]
    """
    B, L, D = x.shape
    K, inner = wdw.shape
    assert K % 2 == 1, "kernel_size must be odd (PyTorch pads asymmetrically for even K)"
    assert w1.shape == (D, 2 * inner) and w2.shape == (inner, D)

    if bf16_taps is None:
        bf16_taps = _default_bf16_taps()
    tap_dtype = jnp.bfloat16 if bf16_taps else jnp.float32
    tap_group = min(max(int(tap_group), 1), K) if bf16_taps else K

    pad = K // 2
    halo = _round_up(pad, 16)                # 16 for K=31 -> 16-row (bf16) aligned windows
    dp = _round_up(D, 128)                   # lane-dense channel padding
    cpad = _round_up(inner, 128)

    l_tile = max(16, _round_up(min(l_tile, _round_up(L, 16)), 16))
    n_tiles = pl.cdiv(L, l_tile)
    l_grid = n_tiles * l_tile
    window = l_tile + 2 * halo

    f32, bf16 = jnp.float32, jnp.bfloat16

    # Zero padding is mathematically exact (zero rows/cols/biases) and stripped
    # at the end; the sequence is pre-padded (and pre-cast to bf16, halving the
    # per-tile window DMA) so every tile window is in-bounds.
    x_pad = jnp.pad(x.astype(bf16),
                    ((0, 0), (halo, halo + l_grid - L), (0, dp - D)))
    w1o = jnp.pad(w1[:, :inner], ((0, dp - D), (0, cpad - inner))).astype(bf16)
    w1g = jnp.pad(w1[:, inner:], ((0, dp - D), (0, cpad - inner))).astype(bf16)
    b1o = jnp.pad(b1[:, :inner], ((0, 0), (0, cpad - inner))).astype(f32)
    b1g = jnp.pad(b1[:, inner:], ((0, 0), (0, cpad - inner))).astype(f32)
    wdw_p = jnp.pad(wdw, ((0, 0), (0, cpad - inner))).astype(tap_dtype)
    bdw_p = jnp.pad(bdw, ((0, 0), (0, cpad - inner))).astype(f32)
    w2_p = jnp.pad(w2, ((0, cpad - inner), (0, dp - D))).astype(bf16)
    b2_p = jnp.pad(b2, ((0, 0), (0, dp - D))).astype(f32)

    kernel = functools.partial(_conv_module_kernel, seq_len=L, l_tile=l_tile,
                               halo=halo, ksize=K, n_tiles=n_tiles,
                               tap_group=tap_group)
    const = lambda shape: pl.BlockSpec(shape, lambda b, t: (0,) * len(shape))

    out_p = pl.pallas_call(
        kernel,
        out_shape=jax.ShapeDtypeStruct((B, L, dp), x.dtype),
        grid_spec=pltpu.PrefetchScalarGridSpec(
            num_scalar_prefetch=0,
            grid=(B, n_tiles),
            in_specs=[
                pl.BlockSpec(memory_space=pl.ANY),   # x stays in HBM; windows DMA'd manually
                const((dp, cpad)), const((dp, cpad)),    # w1 out / gate
                const((1, cpad)), const((1, cpad)),      # b1 out / gate
                const((K, cpad)), const((1, cpad)),      # depthwise w / b
                const((cpad, dp)), const((1, dp)),       # w2 / b2
            ],
            out_specs=pl.BlockSpec((None, l_tile, dp), lambda b, t: (b, t, 0)),
            scratch_shapes=[
                pltpu.VMEM((2, window, dp), bf16),       # double-buffered x window
                pltpu.VMEM((window, cpad), tap_dtype),   # post-GLU activations
                pltpu.SemaphoreType.DMA((2,)),
            ],
        ),
        compiler_params=pltpu.CompilerParams(
            # L-tile axis must run sequentially per batch (window DMA is
            # primed at t == 0); batch axis stays megacore-parallel.
            dimension_semantics=("parallel", "arbitrary"),
            vmem_limit_bytes=_vmem_limit_bytes(),
        ),
    )(x_pad, w1o, w1g, b1o, b1g, wdw_p, bdw_p, w2_p, b2_p)
    return out_p[..., :D]


def reference_forward(x, w1, b1, wdw, bdw, w2, b2):
    """Pure-f32 JAX reference mirroring the PyTorch module exactly."""
    B, L, D = x.shape
    K, inner = wdw.shape
    pad = K // 2
    y = jnp.einsum("bld,df->blf", x, w1) + b1[0]
    z = y[..., :inner] * jax.nn.sigmoid(y[..., inner:])          # nn.GLU(dim=1)
    zp = jnp.pad(z, ((0, 0), (pad, pad), (0, 0)))
    acc = jnp.zeros((B, L, inner), jnp.float32)
    for k in range(K):
        acc = acc + zp[:, k:k + L, :] * wdw[k]
    acc = acc + bdw[0]
    a = acc * jax.nn.sigmoid(acc)                                # SiLU
    return jnp.einsum("blc,cd->bld", a, w2) + b2[0]


def _make_params(key, D, inner, K):
    ks = jax.random.split(key, 6)
    # Conv1d(D, 2*inner, 1): weight (2*inner, D, 1) -> matmul layout (D, 2*inner)
    w1 = 0.1 * jax.random.normal(ks[0], (D, 2 * inner), jnp.float32)
    b1 = 0.1 * jax.random.normal(ks[1], (1, 2 * inner), jnp.float32)
    # depthwise Conv1d(inner, inner, K, groups=inner): weight (inner, 1, K) -> (K, inner)
    wdw = 0.1 * jax.random.normal(ks[2], (K, inner), jnp.float32)
    bdw = 0.1 * jax.random.normal(ks[3], (1, inner), jnp.float32)
    # Conv1d(inner, D, 1): weight (D, inner, 1) -> matmul layout (inner, D)
    w2 = 0.1 * jax.random.normal(ks[4], (inner, D), jnp.float32)
    b2 = 0.1 * jax.random.normal(ks[5], (1, D), jnp.float32)
    return w1, b1, wdw, bdw, w2, b2


if __name__ == "__main__":
    D = 32
    expansion_factor = 2
    kernel_size = 31
    inner = D * expansion_factor          # 64

    key = jax.random.PRNGKey(0)
    kp, kx1, kx2 = jax.random.split(key, 3)
    params = _make_params(kp, D, inner, kernel_size)

    # Case 1: module-consistent small shapes (batch=2, seq=8, dim_model=32).
    x1 = jax.random.normal(kx1, (2, 8, D), jnp.float32)
    out1 = jax.block_until_ready(conformer_conv_module(x1, *params))
    ref1 = reference_forward(x1, *params)
    assert out1.shape == x1.shape
    assert jnp.allclose(out1, ref1, atol=2e-2, rtol=2e-2), "case 1 mismatch vs reference"

    # Case 2: several L-tiles with a partial last tile — exercises the
    # double-buffered window DMA, pl.when-gated masking on edge tiles, the
    # unmasked interior-tile path, and the grouped bf16 tap path.
    x2 = jax.random.normal(kx2, (1, 72, D), jnp.float32)
    out2 = jax.block_until_ready(
        conformer_conv_module(x2, *params, l_tile=16, bf16_taps=True))
    ref2 = reference_forward(x2, *params)
    assert out2.shape == x2.shape
    assert jnp.allclose(out2, ref2, atol=2e-2, rtol=2e-2), "case 2 mismatch vs reference"

    print("KERNEL_OK")
</pallas_src>

<mosaic_0001>
module attributes {stable_mosaic.version = 11 : i64} {
  func.func @_conv_module_kernel(%arg0: i32, %arg1: i32, %arg2: memref<2x48x128xbf16, #tpu.memory_space<any>>, %arg3: memref<128x128xbf16, #tpu.memory_space<vmem>>, %arg4: memref<128x128xbf16, #tpu.memory_space<vmem>>, %arg5: memref<1x128xf32, #tpu.memory_space<vmem>>, %arg6: memref<1x128xf32, #tpu.memory_space<vmem>>, %arg7: memref<31x128xbf16, #tpu.memory_space<vmem>>, %arg8: memref<1x128xf32, #tpu.memory_space<vmem>>, %arg9: memref<128x128xbf16, #tpu.memory_space<vmem>>, %arg10: memref<1x128xf32, #tpu.memory_space<vmem>>, %arg11: memref<1x16x128xf32, #tpu.memory_space<vmem>>, %arg12: memref<2x48x128xbf16, #tpu.memory_space<vmem>>, %arg13: memref<48x128xbf16, #tpu.memory_space<vmem>>, %arg14: memref<2x!tpu.dma_semaphore, #tpu.memory_space<semaphore_mem>>) attributes {dimension_semantics = [#tpu.dimension_semantics<parallel>, #tpu.dimension_semantics<arbitrary>], iteration_bounds = array<i64: 2, 1>, scalar_prefetch = 0 : i64, scratch_operands = 3 : i64, tpu.core_type = #tpu.core_type<tc>, window_params = [{}, {pipeline_mode = #tpu.pipeline_mode<synchronous>, transform_indices = @transform_1, window_bounds = array<i64: 128, 128>}, {pipeline_mode = #tpu.pipeline_mode<synchronous>, transform_indices = @transform_2, window_bounds = array<i64: 128, 128>}, {pipeline_mode = #tpu.pipeline_mode<synchronous>, transform_indices = @transform_3, window_bounds = array<i64: 1, 128>}, {pipeline_mode = #tpu.pipeline_mode<synchronous>, transform_indices = @transform_4, window_bounds = array<i64: 1, 128>}, {pipeline_mode = #tpu.pipeline_mode<synchronous>, transform_indices = @transform_5, window_bounds = array<i64: 31, 128>}, {pipeline_mode = #tpu.pipeline_mode<synchronous>, transform_indices = @transform_6, window_bounds = array<i64: 1, 128>}, {pipeline_mode = #tpu.pipeline_mode<synchronous>, transform_indices = @transform_7, window_bounds = array<i64: 128, 128>}, {pipeline_mode = #tpu.pipeline_mode<synchronous>, transform_indices = @transform_8, window_bounds = array<i64: 1, 128>}, {transform_indices = @transform_9, window_bounds = array<i64: 1, 16, 128>}]} {
    %c2_i32 = arith.constant 2 : i32
    %c0_i32 = arith.constant 0 : i32
    %0 = arith.cmpi eq, %c2_i32, %c0_i32 : i32
    %c1_i32 = arith.constant 1 : i32
    %1 = arith.select %0, %c1_i32, %c2_i32 : i32
    %2 = arith.remsi %arg1, %1 : i32
    %c0_i32_0 = arith.constant 0 : i32
    %3 = arith.cmpi ne, %2, %c0_i32_0 : i32
    %c0_i32_1 = arith.constant 0 : i32
    %4 = arith.cmpi slt, %2, %c0_i32_1 : i32
    %c0_i32_2 = arith.constant 0 : i32
    %5 = arith.cmpi slt, %1, %c0_i32_2 : i32
    %6 = arith.xori %4, %5 : i1
    %7 = arith.andi %6, %3 : i1
    %8 = arith.addi %2, %1 : i32
    %9 = arith.select %7, %8, %2 : i32
    %c0_i32_3 = arith.constant 0 : i32
    %10 = arith.cmpi eq, %arg1, %c0_i32_3 : i32
    %11 = arith.extui %10 : i1 to i32
    %c0_i32_4 = arith.constant 0 : i32
    %12 = arith.cmpi ne, %11, %c0_i32_4 : i32
    scf.if %12 {
      %c0_i32_133 = arith.constant 0 : i32
      %297 = tpu.assume_multiple %c0_i32_133, 16 : i32
      %c0_i32_134 = arith.constant 0 : i32
      %c0_i32_135 = arith.constant 0 : i32
      %c0_i32_136 = arith.constant 0 : i32
      %298 = tpu.memref_slice %arg2[%arg0, %297, %c0_i32_136] : memref<2x48x128xbf16, #tpu.memory_space<any>> -> memref<1x48x128xbf16, #tpu.memory_space<any>>
      %299 = tpu.memref_squeeze %298 : memref<1x48x128xbf16, #tpu.memory_space<any>> -> memref<48x128xbf16, #tpu.memory_space<any>>
      %c0_i32_137 = arith.constant 0 : i32
      %c0_i32_138 = arith.constant 0 : i32
      %300 = tpu.memref_slice %arg12[%c0_i32_134, %c0_i32_137, %c0_i32_138] : memref<2x48x128xbf16, #tpu.memory_space<vmem>> -> memref<1x48x128xbf16, #tpu.memory_space<vmem>>
      %301 = tpu.memref_squeeze %300 : memref<1x48x128xbf16, #tpu.memory_space<vmem>> -> memref<48x128xbf16, #tpu.memory_space<vmem>>
      %302 = tpu.memref_slice %arg14[%c0_i32_135] : memref<2x!tpu.dma_semaphore, #tpu.memory_space<semaphore_mem>> -> memref<1x!tpu.dma_semaphore, #tpu.memory_space<semaphore_mem>>
      %303 = tpu.memref_squeeze %302 : memref<1x!tpu.dma_semaphore, #tpu.memory_space<semaphore_mem>> -> memref<!tpu.dma_semaphore, #tpu.memory_space<semaphore_mem>>
      tpu.enqueue_dma source(%299 : memref<48x128xbf16, #tpu.memory_space<any>>) target(%301 : memref<48x128xbf16, #tpu.memory_space<vmem>>) target_semaphore(%303 : memref<!tpu.dma_semaphore, #tpu.memory_space<semaphore_mem>>)
    } else {
    }
    %c1_i32_5 = arith.constant 1 : i32
    %13 = arith.addi %arg1, %c1_i32_5 : i32
    %c1_i32_6 = arith.constant 1 : i32
    %14 = arith.cmpi slt, %13, %c1_i32_6 : i32
    %15 = arith.extui %14 : i1 to i32
    %c0_i32_7 = arith.constant 0 : i32
    %16 = arith.cmpi ne, %15, %c0_i32_7 : i32
    scf.if %16 {
      %c1_i32_133 = arith.constant 1 : i32
      %297 = arith.addi %arg1, %c1_i32_133 : i32
      %c1_i32_134 = arith.constant 1 : i32
      %298 = arith.subi %c1_i32_134, %9 : i32
      %c16_i32_135 = arith.constant 16 : i32
      %299 = arith.muli %297, %c16_i32_135 : i32
      %300 = tpu.assume_multiple %299, 16 : i32
      %c0_i32_136 = arith.constant 0 : i32
      %301 = tpu.memref_slice %arg2[%arg0, %300, %c0_i32_136] : memref<2x48x128xbf16, #tpu.memory_space<any>> -> memref<1x48x128xbf16, #tpu.memory_space<any>>
      %302 = tpu.memref_squeeze %301 : memref<1x48x128xbf16, #tpu.memory_space<any>> -> memref<48x128xbf16, #tpu.memory_space<any>>
      %c0_i32_137 = arith.constant 0 : i32
      %c0_i32_138 = arith.constant 0 : i32
      %303 = tpu.memref_slice %arg12[%298, %c0_i32_137, %c0_i32_138] : memref<2x48x128xbf16, #tpu.memory_space<vmem>> -> memref<1x48x128xbf16, #tpu.memory_space<vmem>>
      %304 = tpu.memref_squeeze %303 : memref<1x48x128xbf16, #tpu.memory_space<vmem>> -> memref<48x128xbf16, #tpu.memory_space<vmem>>
      %305 = tpu.memref_slice %arg14[%298] : memref<2x!tpu.dma_semaphore, #tpu.memory_space<semaphore_mem>> -> memref<1x!tpu.dma_semaphore, #tpu.memory_space<semaphore_mem>>
      %306 = tpu.memref_squeeze %305 : memref<1x!tpu.dma_semaphore, #tpu.memory_space<semaphore_mem>> -> memref<!tpu.dma_semaphore, #tpu.memory_space<semaphore_mem>>
      tpu.enqueue_dma source(%302 : memref<48x128xbf16, #tpu.memory_space<any>>) target(%304 : memref<48x128xbf16, #tpu.memory_space<vmem>>) target_semaphore(%306 : memref<!tpu.dma_semaphore, #tpu.memory_space<semaphore_mem>>)
    } else {
    }
    %c0_i32_8 = arith.constant 0 : i32
    %c0_i32_9 = arith.constant 0 : i32
    %17 = tpu.memref_slice %arg2[%arg0, %c0_i32_8, %c0_i32_9] : memref<2x48x128xbf16, #tpu.memory_space<any>> -> memref<1x48x128xbf16, #tpu.memory_space<any>>
    %18 = tpu.memref_squeeze %17 : memref<1x48x128xbf16, #tpu.memory_space<any>> -> memref<48x128xbf16, #tpu.memory_space<any>>
    %c0_i32_10 = arith.constant 0 : i32
    %c0_i32_11 = arith.constant 0 : i32
    %19 = tpu.memref_slice %arg12[%9, %c0_i32_10, %c0_i32_11] : memref<2x48x128xbf16, #tpu.memory_space<vmem>> -> memref<1x48x128xbf16, #tpu.memory_space<vmem>>
    %20 = tpu.memref_squeeze %19 : memref<1x48x128xbf16, #tpu.memory_space<vmem>> -> memref<48x128xbf16, #tpu.memory_space<vmem>>
    %21 = tpu.memref_slice %arg14[%9] : memref<2x!tpu.dma_semaphore, #tpu.memory_space<semaphore_mem>> -> memref<1x!tpu.dma_semaphore, #tpu.memory_space<semaphore_mem>>
    %22 = tpu.memref_squeeze %21 : memref<1x!tpu.dma_semaphore, #tpu.memory_space<semaphore_mem>> -> memref<!tpu.dma_semaphore, #tpu.memory_space<semaphore_mem>>
    tpu.wait_dma2 semaphore(%22 : memref<!tpu.dma_semaphore, #tpu.memory_space<semaphore_mem>>) src(%18 : memref<48x128xbf16, #tpu.memory_space<any>>) dst(%20 : memref<48x128xbf16, #tpu.memory_space<vmem>>)
    %23 = arith.index_cast %9 : i32 to index
    %c0 = arith.constant 0 : index
    %c0_12 = arith.constant 0 : index
    %24 = vector.load %arg12[%23, %c0, %c0_12] : memref<2x48x128xbf16, #tpu.memory_space<vmem>>, vector<1x48x128xbf16>
    %25 = vector.shape_cast %24 : vector<1x48x128xbf16> to vector<48x128xbf16>
    %c0_13 = arith.constant 0 : index
    %c0_14 = arith.constant 0 : index
    %26 = vector.load %arg3[%c0_13, %c0_14] : memref<128x128xbf16, #tpu.memory_space<vmem>>, vector<128x128xbf16>
    %cst = arith.constant dense<0.000000e+00> : vector<48x128xf32>
    %27 = tpu.matmul %25, %26, %cst {dimension_numbers = #tpu.dot_dimension_numbers<[1], [0], [0], [1], [0, 0, 1, 1], [], []>} : vector<48x128xbf16>, vector<128x128xbf16>, vector<48x128xf32> -> vector<48x128xf32>
    %c0_15 = arith.constant 0 : index
    %c0_16 = arith.constant 0 : index
    %28 = vector.load %arg5[%c0_15, %c0_16] : memref<1x128xf32, #tpu.memory_space<vmem>>, vector<1x128xf32>
    %29 = vector.broadcast %28 : vector<1x128xf32> to vector<48x128xf32>
    %30 = arith.addf %27, %29 : vector<48x128xf32>
    %c0_17 = arith.constant 0 : index
    %c0_18 = arith.constant 0 : index
    %31 = vector.load %arg4[%c0_17, %c0_18] : memref<128x128xbf16, #tpu.memory_space<vmem>>, vector<128x128xbf16>
    %cst_19 = arith.constant dense<0.000000e+00> : vector<48x128xf32>
    %32 = tpu.matmul %25, %31, %cst_19 {dimension_numbers = #tpu.dot_dimension_numbers<[1], [0], [0], [1], [0, 0, 1, 1], [], []>} : vector<48x128xbf16>, vector<128x128xbf16>, vector<48x128xf32> -> vector<48x128xf32>
    %c0_20 = arith.constant 0 : index
    %c0_21 = arith.constant 0 : index
    %33 = vector.load %arg6[%c0_20, %c0_21] : memref<1x128xf32, #tpu.memory_space<vmem>>, vector<1x128xf32>
    %34 = vector.broadcast %33 : vector<1x128xf32> to vector<48x128xf32>
    %35 = arith.addf %32, %34 : vector<48x128xf32>
    %36 = arith.negf %35 : vector<48x128xf32>
    %37 = math.exp %36 : vector<48x128xf32>
    %cst_22 = arith.constant 1.000000e+00 : f32
    %38 = vector.broadcast %cst_22 : f32 to vector<48x128xf32>
    %39 = arith.addf %38, %37 : vector<48x128xf32>
    %40 = arith.divf %38, %39 : vector<48x128xf32>
    %41 = arith.mulf %30, %40 : vector<48x128xf32>
    %c16_i32 = arith.constant 16 : i32
    %42 = arith.muli %arg1, %c16_i32 : i32
    %c16_i32_23 = arith.constant 16 : i32
    %43 = arith.cmpi slt, %42, %c16_i32_23 : i32
    %c16_i32_24 = arith.constant 16 : i32
    %44 = arith.addi %42, %c16_i32_24 : i32
    %c16_i32_25 = arith.constant 16 : i32
    %45 = arith.addi %44, %c16_i32_25 : i32
    %c8_i32 = arith.constant 8 : i32
    %46 = arith.cmpi sgt, %45, %c8_i32 : i32
    %47 = arith.ori %43, %46 : i1
    %48 = arith.extui %47 : i1 to i32
    %c0_i32_26 = arith.constant 0 : i32
    %49 = arith.cmpi ne, %48, %c0_i32_26 : i32
    scf.if %49 {
      %297 = tpu.iota {dimensions = array<i32: 0>} : vector<48x1xi32>
      %c16_i32_133 = arith.constant 16 : i32
      %298 = arith.subi %42, %c16_i32_133 : i32
      %299 = vector.broadcast %298 : i32 to vector<48x1xi32>
      %300 = arith.addi %299, %297 : vector<48x1xi32>
      %c0_i32_134 = arith.constant 0 : i32
      %301 = vector.broadcast %c0_i32_134 : i32 to vector<48x1xi32>
      %302 = arith.cmpi sge, %300, %301 : vector<48x1xi32>
      %c8_i32_135 = arith.constant 8 : i32
      %303 = vector.broadcast %c8_i32_135 : i32 to vector<48x1xi32>
      %304 = arith.cmpi slt, %300, %303 : vector<48x1xi32>
      %305 = arith.andi %302, %304 : vector<48x1xi1>
      %cst_136 = arith.constant 0.000000e+00 : f32
      %306 = vector.shape_cast %305 : vector<48x1xi1> to vector<48x1xi1>
      %307 = vector.broadcast %306 : vector<48x1xi1> to vector<48x128xi1>
      %308 = vector.broadcast %cst_136 : f32 to vector<48x128xf32>
      %309 = arith.select %307, %41, %308 : vector<48x128xi1>, vector<48x128xf32>
      %310 = arith.truncf %309 : vector<48x128xf32> to vector<48x128xbf16>
      %c0_137 = arith.constant 0 : index
      %c0_138 = arith.constant 0 : index
      %311 = vector.load %arg13[%c0_137, %c0_138] : memref<48x128xbf16, #tpu.memory_space<vmem>>, vector<48x128xbf16>
      tpu.vector_store %arg13[%c0_137, %c0_138], %310 {strides = array<i32>} : memref<48x128xbf16, #tpu.memory_space<vmem>>, vector<48x128xbf16>,
    } else {
    }
    %true = arith.constant true
    %50 = arith.xori %47, %true : i1
    %51 = arith.extui %50 : i1 to i32
    %c0_i32_27 = arith.constant 0 : i32
    %52 = arith.cmpi ne, %51, %c0_i32_27 : i32
    scf.if %52 {
      %297 = arith.truncf %41 : vector<48x128xf32> to vector<48x128xbf16>
      %c0_133 = arith.constant 0 : index
      %c0_134 = arith.constant 0 : index
      %298 = vector.load %arg13[%c0_133, %c0_134] : memref<48x128xbf16, #tpu.memory_space<vmem>>, vector<48x128xbf16>
      tpu.vector_store %arg13[%c0_133, %c0_134], %297 {strides = array<i32>} : memref<48x128xbf16, #tpu.memory_space<vmem>>, vector<48x128xbf16>,
    } else {
    }
    %cst_28 = arith.constant 0.000000e+00 : f32
    %53 = vector.broadcast %cst_28 : f32 to vector<16x128xf32>
    %c1 = arith.constant 1 : index
    %c0_29 = arith.constant 0 : index
    %54 = vector.load %arg13[%c1, %c0_29] : memref<48x128xbf16, #tpu.memory_space<vmem>>, vector<16x128xbf16>
    %c0_30 = arith.constant 0 : index
    %c0_31 = arith.constant 0 : index
    %55 = vector.load %arg7[%c0_30, %c0_31] : memref<31x128xbf16, #tpu.memory_space<vmem>>, vector<1x128xbf16>
    %56 = vector.shape_cast %55 : vector<1x128xbf16> to vector<128xbf16>
    %57 = vector.shape_cast %56 : vector<128xbf16> to vector<1x128xbf16>
    %58 = vector.broadcast %57 : vector<1x128xbf16> to vector<16x128xbf16>
    %59 = arith.mulf %54, %58 : vector<16x128xbf16>
    %c2 = arith.constant 2 : index
    %c0_32 = arith.constant 0 : index
    %60 = vector.load %arg13[%c2, %c0_32] : memref<48x128xbf16, #tpu.memory_space<vmem>>, vector<16x128xbf16>
    %c1_33 = arith.constant 1 : index
    %c0_34 = arith.constant 0 : index
    %61 = vector.load %arg7[%c1_33, %c0_34] : memref<31x128xbf16, #tpu.memory_space<vmem>>, vector<1x128xbf16>
    %62 = vector.shape_cast %61 : vector<1x128xbf16> to vector<128xbf16>
    %63 = vector.shape_cast %62 : vector<128xbf16> to vector<1x128xbf16>
    %64 = vector.broadcast %63 : vector<1x128xbf16> to vector<16x128xbf16>
    %65 = arith.mulf %60, %64 : vector<16x128xbf16>
    %66 = arith.addf %59, %65 : vector<16x128xbf16>
    %c3 = arith.constant 3 : index
    %c0_35 = arith.constant 0 : index
    %67 = vector.load %arg13[%c3, %c0_35] : memref<48x128xbf16, #tpu.memory_space<vmem>>, vector<16x128xbf16>
    %c2_36 = arith.constant 2 : index
    %c0_37 = arith.constant 0 : index
    %68 = vector.load %arg7[%c2_36, %c0_37] : memref<31x128xbf16, #tpu.memory_space<vmem>>, vector<1x128xbf16>
    %69 = vector.shape_cast %68 : vector<1x128xbf16> to vector<128xbf16>
    %70 = vector.shape_cast %69 : vector<128xbf16> to vector<1x128xbf16>
    %71 = vector.broadcast %70 : vector<1x128xbf16> to vector<16x128xbf16>
    %72 = arith.mulf %67, %71 : vector<16x128xbf16>
    %73 = arith.addf %66, %72 : vector<16x128xbf16>
    %c4 = arith.constant 4 : index
    %c0_38 = arith.constant 0 : index
    %74 = vector.load %arg13[%c4, %c0_38] : memref<48x128xbf16, #tpu.memory_space<vmem>>, vector<16x128xbf16>
    %c3_39 = arith.constant 3 : index
    %c0_40 = arith.constant 0 : index
    %75 = vector.load %arg7[%c3_39, %c0_40] : memref<31x128xbf16, #tpu.memory_space<vmem>>, vector<1x128xbf16>
    %76 = vector.shape_cast %75 : vector<1x128xbf16> to vector<128xbf16>
    %77 = vector.shape_cast %76 : vector<128xbf16> to vector<1x128xbf16>
    %78 = vector.broadcast %77 : vector<1x128xbf16> to vector<16x128xbf16>
    %79 = arith.mulf %74, %78 : vector<16x128xbf16>
    %80 = arith.addf %73, %79 : vector<16x128xbf16>
    %81 = arith.extf %80 : vector<16x128xbf16> to vector<16x128xf32>
    %82 = arith.addf %53, %81 : vector<16x128xf32>
    %c5 = arith.constant 5 : index
    %c0_41 = arith.constant 0 : index
    %83 = vector.load %arg13[%c5, %c0_41] : memref<48x128xbf16, #tpu.memory_space<vmem>>, vector<16x128xbf16>
    %c4_42 = arith.constant 4 : index
    %c0_43 = arith.constant 0 : index
    %84 = vector.load %arg7[%c4_42, %c0_43] : memref<31x128xbf16, #tpu.memory_space<vmem>>, vector<1x128xbf16>
    %85 = vector.shape_cast %84 : vector<1x128xbf16> to vector<128xbf16>
    %86 = vector.shape_cast %85 : vector<128xbf16> to vector<1x128xbf16>
    %87 = vector.broadcast %86 : vector<1x128xbf16> to vector<16x128xbf16>
    %88 = arith.mulf %83, %87 : vector<16x128xbf16>
    %c6 = arith.constant 6 : index
    %c0_44 = arith.constant 0 : index
    %89 = vector.load %arg13[%c6, %c0_44] : memref<48x128xbf16, #tpu.memory_space<vmem>>, vector<16x128xbf16>
    %c5_45 = arith.constant 5 : index
    %c0_46 = arith.constant 0 : index
    %90 = vector.load %arg7[%c5_45, %c0_46] : memref<31x128xbf16, #tpu.memory_space<vmem>>, vector<1x128xbf16>
    %91 = vector.shape_cast %90 : vector<1x128xbf16> to vector<128xbf16>
    %92 = vector.shape_cast %91 : vector<128xbf16> to vector<1x128xbf16>
    %93 = vector.broadcast %92 : vector<1x128xbf16> to vector<16x128xbf16>
    %94 = arith.mulf %89, %93 : vector<16x128xbf16>
    %95 = arith.addf %88, %94 : vector<16x128xbf16>
    %c7 = arith.constant 7 : index
    %c0_47 = arith.constant 0 : index
    %96 = vector.load %arg13[%c7, %c0_47] : memref<48x128xbf16, #tpu.memory_space<vmem>>, vector<16x128xbf16>
    %c6_48 = arith.constant 6 : index
    %c0_49 = arith.constant 0 : index
    %97 = vector.load %arg7[%c6_48, %c0_49] : memref<31x128xbf16, #tpu.memory_space<vmem>>, vector<1x128xbf16>
    %98 = vector.shape_cast %97 : vector<1x128xbf16> to vector<128xbf16>
    %99 = vector.shape_cast %98 : vector<128xbf16> to vector<1x128xbf16>
    %100 = vector.broadcast %99 : vector<1x128xbf16> to vector<16x128xbf16>
    %101 = arith.mulf %96, %100 : vector<16x128xbf16>
    %102 = arith.addf %95, %101 : vector<16x128xbf16>
    %c8 = arith.constant 8 : index
    %c0_50 = arith.constant 0 : index
    %103 = vector.load %arg13[%c8, %c0_50] : memref<48x128xbf16, #tpu.memory_space<vmem>>, vector<16x128xbf16>
    %c7_51 = arith.constant 7 : index
    %c0_52 = arith.constant 0 : index
    %104 = vector.load %arg7[%c7_51, %c0_52] : memref<31x128xbf16, #tpu.memory_space<vmem>>, vector<1x128xbf16>
    %105 = vector.shape_cast %104 : vector<1x128xbf16> to vector<128xbf16>
    %106 = vector.shape_cast %105 : vector<128xbf16> to vector<1x128xbf16>
    %107 = vector.broadcast %106 : vector<1x128xbf16> to vector<16x128xbf16>
    %108 = arith.mulf %103, %107 : vector<16x128xbf16>
    %109 = arith.addf %102, %108 : vector<16x128xbf16>
    %110 = arith.extf %109 : vector<16x128xbf16> to vector<16x128xf32>
    %111 = arith.addf %82, %110 : vector<16x128xf32>
    %c9 = arith.constant 9 : index
    %c0_53 = arith.constant 0 : index
    %112 = vector.load %arg13[%c9, %c0_53] : memref<48x128xbf16, #tpu.memory_space<vmem>>, vector<16x128xbf16>
    %c8_54 = arith.constant 8 : index
    %c0_55 = arith.constant 0 : index
    %113 = vector.load %arg7[%c8_54, %c0_55] : memref<31x128xbf16, #tpu.memory_space<vmem>>, vector<1x128xbf16>
    %114 = vector.shape_cast %113 : vector<1x128xbf16> to vector<128xbf16>
    %115 = vector.shape_cast %114 : vector<128xbf16> to vector<1x128xbf16>
    %116 = vector.broadcast %115 : vector<1x128xbf16> to vector<16x128xbf16>
    %117 = arith.mulf %112, %116 : vector<16x128xbf16>
    %c10 = arith.constant 10 : index
    %c0_56 = arith.constant 0 : index
    %118 = vector.load %arg13[%c10, %c0_56] : memref<48x128xbf16, #tpu.memory_space<vmem>>, vector<16x128xbf16>
    %c9_57 = arith.constant 9 : index
    %c0_58 = arith.constant 0 : index
    %119 = vector.load %arg7[%c9_57, %c0_58] : memref<31x128xbf16, #tpu.memory_space<vmem>>, vector<1x128xbf16>
    %120 = vector.shape_cast %119 : vector<1x128xbf16> to vector<128xbf16>
    %121 = vector.shape_cast %120 : vector<128xbf16> to vector<1x128xbf16>
    %122 = vector.broadcast %121 : vector<1x128xbf16> to vector<16x128xbf16>
    %123 = arith.mulf %118, %122 : vector<16x128xbf16>
    %124 = arith.addf %117, %123 : vector<16x128xbf16>
    %c11 = arith.constant 11 : index
    %c0_59 = arith.constant 0 : index
    %125 = vector.load %arg13[%c11, %c0_59] : memref<48x128xbf16, #tpu.memory_space<vmem>>, vector<16x128xbf16>
    %c10_60 = arith.constant 10 : index
    %c0_61 = arith.constant 0 : index
    %126 = vector.load %arg7[%c10_60, %c0_61] : memref<31x128xbf16, #tpu.memory_space<vmem>>, vector<1x128xbf16>
    %127 = vector.shape_cast %126 : vector<1x128xbf16> to vector<128xbf16>
    %128 = vector.shape_cast %127 : vector<128xbf16> to vector<1x128xbf16>
    %129 = vector.broadcast %128 : vector<1x128xbf16> to vector<16x128xbf16>
    %130 = arith.mulf %125, %129 : vector<16x128xbf16>
    %131 = arith.addf %124, %130 : vector<16x128xbf16>
    %c12 = arith.constant 12 : index
    %c0_62 = arith.constant 0 : index
    %132 = vector.load %arg13[%c12, %c0_62] : memref<48x128xbf16, #tpu.memory_space<vmem>>, vector<16x128xbf16>
    %c11_63 = arith.constant 11 : index
    %c0_64 = arith.constant 0 : index
    %133 = vector.load %arg7[%c11_63, %c0_64] : memref<31x128xbf16, #tpu.memory_space<vmem>>, vector<1x128xbf16>
    %134 = vector.shape_cast %133 : vector<1x128xbf16> to vector<128xbf16>
    %135 = vector.shape_cast %134 : vector<128xbf16> to vector<1x128xbf16>
    %136 = vector.broadcast %135 : vector<1x128xbf16> to vector<16x128xbf16>
    %137 = arith.mulf %132, %136 : vector<16x128xbf16>
    %138 = arith.addf %131, %137 : vector<16x128xbf16>
    %139 = arith.extf %138 : vector<16x128xbf16> to vector<16x128xf32>
    %140 = arith.addf %111, %139 : vector<16x128xf32>
    %c13 = arith.constant 13 : index
    %c0_65 = arith.constant 0 : index
    %141 = vector.load %arg13[%c13, %c0_65] : memref<48x128xbf16, #tpu.memory_space<vmem>>, vector<16x128xbf16>
    %c12_66 = arith.constant 12 : index
    %c0_67 = arith.constant 0 : index
    %142 = vector.load %arg7[%c12_66, %c0_67] : memref<31x128xbf16, #tpu.memory_space<vmem>>, vector<1x128xbf16>
    %143 = vector.shape_cast %142 : vector<1x128xbf16> to vector<128xbf16>
    %144 = vector.shape_cast %143 : vector<128xbf16> to vector<1x128xbf16>
    %145 = vector.broadcast %144 : vector<1x128xbf16> to vector<16x128xbf16>
    %146 = arith.mulf %141, %145 : vector<16x128xbf16>
    %c14 = arith.constant 14 : index
    %c0_68 = arith.constant 0 : index
    %147 = vector.load %arg13[%c14, %c0_68] : memref<48x128xbf16, #tpu.memory_space<vmem>>, vector<16x128xbf16>
    %c13_69 = arith.constant 13 : index
    %c0_70 = arith.constant 0 : index
    %148 = vector.load %arg7[%c13_69, %c0_70] : memref<31x128xbf16, #tpu.memory_space<vmem>>, vector<1x128xbf16>
    %149 = vector.shape_cast %148 : vector<1x128xbf16> to vector<128xbf16>
    %150 = vector.shape_cast %149 : vector<128xbf16> to vector<1x128xbf16>
    %151 = vector.broadcast %150 : vector<1x128xbf16> to vector<16x128xbf16>
    %152 = arith.mulf %147, %151 : vector<16x128xbf16>
    %153 = arith.addf %146, %152 : vector<16x128xbf16>
    %c15 = arith.constant 15 : index
    %c0_71 = arith.constant 0 : index
    %154 = vector.load %arg13[%c15, %c0_71] : memref<48x128xbf16, #tpu.memory_space<vmem>>, vector<16x128xbf16>
    %c14_72 = arith.constant 14 : index
    %c0_73 = arith.constant 0 : index
    %155 = vector.load %arg7[%c14_72, %c0_73] : memref<31x128xbf16, #tpu.memory_space<vmem>>, vector<1x128xbf16>
    %156 = vector.shape_cast %155 : vector<1x128xbf16> to vector<128xbf16>
    %157 = vector.shape_cast %156 : vector<128xbf16> to vector<1x128xbf16>
    %158 = vector.broadcast %157 : vector<1x128xbf16> to vector<16x128xbf16>
    %159 = arith.mulf %154, %158 : vector<16x128xbf16>
    %160 = arith.addf %153, %159 : vector<16x128xbf16>
    %c16 = arith.constant 16 : index
    %c0_74 = arith.constant 0 : index
    %161 = vector.load %arg13[%c16, %c0_74] : memref<48x128xbf16, #tpu.memory_space<vmem>>, vector<16x128xbf16>
    %c15_75 = arith.constant 15 : index
    %c0_76 = arith.constant 0 : index
    %162 = vector.load %arg7[%c15_75, %c0_76] : memref<31x128xbf16, #tpu.memory_space<vmem>>, vector<1x128xbf16>
    %163 = vector.shape_cast %162 : vector<1x128xbf16> to vector<128xbf16>
    %164 = vector.shape_cast %163 : vector<128xbf16> to vector<1x128xbf16>
    %165 = vector.broadcast %164 : vector<1x128xbf16> to vector<16x128xbf16>
    %166 = arith.mulf %161, %165 : vector<16x128xbf16>
    %167 = arith.addf %160, %166 : vector<16x128xbf16>
    %168 = arith.extf %167 : vector<16x128xbf16> to vector<16x128xf32>
    %169 = arith.addf %140, %168 : vector<16x128xf32>
    %c17 = arith.constant 17 : index
    %c0_77 = arith.constant 0 : index
    %170 = vector.load %arg13[%c17, %c0_77] : memref<48x128xbf16, #tpu.memory_space<vmem>>, vector<16x128xbf16>
    %c16_78 = arith.constant 16 : index
    %c0_79 = arith.constant 0 : index
    %171 = vector.load %arg7[%c16_78, %c0_79] : memref<31x128xbf16, #tpu.memory_space<vmem>>, vector<1x128xbf16>
    %172 = vector.shape_cast %171 : vector<1x128xbf16> to vector<128xbf16>
    %173 = vector.shape_cast %172 : vector<128xbf16> to vector<1x128xbf16>
    %174 = vector.broadcast %173 : vector<1x128xbf16> to vector<16x128xbf16>
    %175 = arith.mulf %170, %174 : vector<16x128xbf16>
    %c18 = arith.constant 18 : index
    %c0_80 = arith.constant 0 : index
    %176 = vector.load %arg13[%c18, %c0_80] : memref<48x128xbf16, #tpu.memory_space<vmem>>, vector<16x128xbf16>
    %c17_81 = arith.constant 17 : index
    %c0_82 = arith.constant 0 : index
    %177 = vector.load %arg7[%c17_81, %c0_82] : memref<31x128xbf16, #tpu.memory_space<vmem>>, vector<1x128xbf16>
    %178 = vector.shape_cast %177 : vector<1x128xbf16> to vector<128xbf16>
    %179 = vector.shape_cast %178 : vector<128xbf16> to vector<1x128xbf16>
    %180 = vector.broadcast %179 : vector<1x128xbf16> to vector<16x128xbf16>
    %181 = arith.mulf %176, %180 : vector<16x128xbf16>
    %182 = arith.addf %175, %181 : vector<16x128xbf16>
    %c19 = arith.constant 19 : index
    %c0_83 = arith.constant 0 : index
    %183 = vector.load %arg13[%c19, %c0_83] : memref<48x128xbf16, #tpu.memory_space<vmem>>, vector<16x128xbf16>
    %c18_84 = arith.constant 18 : index
    %c0_85 = arith.constant 0 : index
    %184 = vector.load %arg7[%c18_84, %c0_85] : memref<31x128xbf16, #tpu.memory_space<vmem>>, vector<1x128xbf16>
    %185 = vector.shape_cast %184 : vector<1x128xbf16> to vector<128xbf16>
    %186 = vector.shape_cast %185 : vector<128xbf16> to vector<1x128xbf16>
    %187 = vector.broadcast %186 : vector<1x128xbf16> to vector<16x128xbf16>
    %188 = arith.mulf %183, %187 : vector<16x128xbf16>
    %189 = arith.addf %182, %188 : vector<16x128xbf16>
    %c20 = arith.constant 20 : index
    %c0_86 = arith.constant 0 : index
    %190 = vector.load %arg13[%c20, %c0_86] : memref<48x128xbf16, #tpu.memory_space<vmem>>, vector<16x128xbf16>
    %c19_87 = arith.constant 19 : index
    %c0_88 = arith.constant 0 : index
    %191 = vector.load %arg7[%c19_87, %c0_88] : memref<31x128xbf16, #tpu.memory_space<vmem>>, vector<1x128xbf16>
    %192 = vector.shape_cast %191 : vector<1x128xbf16> to vector<128xbf16>
    %193 = vector.shape_cast %192 : vector<128xbf16> to vector<1x128xbf16>
    %194 = vector.broadcast %193 : vector<1x128xbf16> to vector<16x128xbf16>
    %195 = arith.mulf %190, %194 : vector<16x128xbf16>
    %196 = arith.addf %189, %195 : vector<16x128xbf16>
    %197 = arith.extf %196 : vector<16x128xbf16> to vector<16x128xf32>
    %198 = arith.addf %169, %197 : vector<16x128xf32>
    %c21 = arith.constant 21 : index
    %c0_89 = arith.constant 0 : index
    %199 = vector.load %arg13[%c21, %c0_89] : memref<48x128xbf16, #tpu.memory_space<vmem>>, vector<16x128xbf16>
    %c20_90 = arith.constant 20 : index
    %c0_91 = arith.constant 0 : index
    %200 = vector.load %arg7[%c20_90, %c0_91] : memref<31x128xbf16, #tpu.memory_space<vmem>>, vector<1x128xbf16>
    %201 = vector.shape_cast %200 : vector<1x128xbf16> to vector<128xbf16>
    %202 = vector.shape_cast %201 : vector<128xbf16> to vector<1x128xbf16>
    %203 = vector.broadcast %202 : vector<1x128xbf16> to vector<16x128xbf16>
    %204 = arith.mulf %199, %203 : vector<16x128xbf16>
    %c22 = arith.constant 22 : index
    %c0_92 = arith.constant 0 : index
    %205 = vector.load %arg13[%c22, %c0_92] : memref<48x128xbf16, #tpu.memory_space<vmem>>, vector<16x128xbf16>
    %c21_93 = arith.constant 21 : index
    %c0_94 = arith.constant 0 : index
    %206 = vector.load %arg7[%c21_93, %c0_94] : memref<31x128xbf16, #tpu.memory_space<vmem>>, vector<1x128xbf16>
    %207 = vector.shape_cast %206 : vector<1x128xbf16> to vector<128xbf16>
    %208 = vector.shape_cast %207 : vector<128xbf16> to vector<1x128xbf16>
    %209 = vector.broadcast %208 : vector<1x128xbf16> to vector<16x128xbf16>
    %210 = arith.mulf %205, %209 : vector<16x128xbf16>
    %211 = arith.addf %204, %210 : vector<16x128xbf16>
    %c23 = arith.constant 23 : index
    %c0_95 = arith.constant 0 : index
    %212 = vector.load %arg13[%c23, %c0_95] : memref<48x128xbf16, #tpu.memory_space<vmem>>, vector<16x128xbf16>
    %c22_96 = arith.constant 22 : index
    %c0_97 = arith.constant 0 : index
    %213 = vector.load %arg7[%c22_96, %c0_97] : memref<31x128xbf16, #tpu.memory_space<vmem>>, vector<1x128xbf16>
    %214 = vector.shape_cast %213 : vector<1x128xbf16> to vector<128xbf16>
    %215 = vector.shape_cast %214 : vector<128xbf16> to vector<1x128xbf16>
    %216 = vector.broadcast %215 : vector<1x128xbf16> to vector<16x128xbf16>
    %217 = arith.mulf %212, %216 : vector<16x128xbf16>
    %218 = arith.addf %211, %217 : vector<16x128xbf16>
    %c24 = arith.constant 24 : index
    %c0_98 = arith.constant 0 : index
    %219 = vector.load %arg13[%c24, %c0_98] : memref<48x128xbf16, #tpu.memory_space<vmem>>, vector<16x128xbf16>
    %c23_99 = arith.constant 23 : index
    %c0_100 = arith.constant 0 : index
    %220 = vector.load %arg7[%c23_99, %c0_100] : memref<31x128xbf16, #tpu.memory_space<vmem>>, vector<1x128xbf16>
    %221 = vector.shape_cast %220 : vector<1x128xbf16> to vector<128xbf16>
    %222 = vector.shape_cast %221 : vector<128xbf16> to vector<1x128xbf16>
    %223 = vector.broadcast %222 : vector<1x128xbf16> to vector<16x128xbf16>
    %224 = arith.mulf %219, %223 : vector<16x128xbf16>
    %225 = arith.addf %218, %224 : vector<16x128xbf16>
    %226 = arith.extf %225 : vector<16x128xbf16> to vector<16x128xf32>
    %227 = arith.addf %198, %226 : vector<16x128xf32>
    %c25 = arith.constant 25 : index
    %c0_101 = arith.constant 0 : index
    %228 = vector.load %arg13[%c25, %c0_101] : memref<48x128xbf16, #tpu.memory_space<vmem>>, vector<16x128xbf16>
    %c24_102 = arith.constant 24 : index
    %c0_103 = arith.constant 0 : index
    %229 = vector.load %arg7[%c24_102, %c0_103] : memref<31x128xbf16, #tpu.memory_space<vmem>>, vector<1x128xbf16>
    %230 = vector.shape_cast %229 : vector<1x128xbf16> to vector<128xbf16>
    %231 = vector.shape_cast %230 : vector<128xbf16> to vector<1x128xbf16>
    %232 = vector.broadcast %231 : vector<1x128xbf16> to vector<16x128xbf16>
    %233 = arith.mulf %228, %232 : vector<16x128xbf16>
    %c26 = arith.constant 26 : index
    %c0_104 = arith.constant 0 : index
    %234 = vector.load %arg13[%c26, %c0_104] : memref<48x128xbf16, #tpu.memory_space<vmem>>, vector<16x128xbf16>
    %c25_105 = arith.constant 25 : index
    %c0_106 = arith.constant 0 : index
    %235 = vector.load %arg7[%c25_105, %c0_106] : memref<31x128xbf16, #tpu.memory_space<vmem>>, vector<1x128xbf16>
    %236 = vector.shape_cast %235 : vector<1x128xbf16> to vector<128xbf16>
    %237 = vector.shape_cast %236 : vector<128xbf16> to vector<1x128xbf16>
    %238 = vector.broadcast %237 : vector<1x128xbf16> to vector<16x128xbf16>
    %239 = arith.mulf %234, %238 : vector<16x128xbf16>
    %240 = arith.addf %233, %239 : vector<16x128xbf16>
    %c27 = arith.constant 27 : index
    %c0_107 = arith.constant 0 : index
    %241 = vector.load %arg13[%c27, %c0_107] : memref<48x128xbf16, #tpu.memory_space<vmem>>, vector<16x128xbf16>
    %c26_108 = arith.constant 26 : index
    %c0_109 = arith.constant 0 : index
    %242 = vector.load %arg7[%c26_108, %c0_109] : memref<31x128xbf16, #tpu.memory_space<vmem>>, vector<1x128xbf16>
    %243 = vector.shape_cast %242 : vector<1x128xbf16> to vector<128xbf16>
    %244 = vector.shape_cast %243 : vector<128xbf16> to vector<1x128xbf16>
    %245 = vector.broadcast %244 : vector<1x128xbf16> to vector<16x128xbf16>
    %246 = arith.mulf %241, %245 : vector<16x128xbf16>
    %247 = arith.addf %240, %246 : vector<16x128xbf16>
    %c28 = arith.constant 28 : index
    %c0_110 = arith.constant 0 : index
    %248 = vector.load %arg13[%c28, %c0_110] : memref<48x128xbf16, #tpu.memory_space<vmem>>, vector<16x128xbf16>
    %c27_111 = arith.constant 27 : index
    %c0_112 = arith.constant 0 : index
    %249 = vector.load %arg7[%c27_111, %c0_112] : memref<31x128xbf16, #tpu.memory_space<vmem>>, vector<1x128xbf16>
    %250 = vector.shape_cast %249 : vector<1x128xbf16> to vector<128xbf16>
    %251 = vector.shape_cast %250 : vector<128xbf16> to vector<1x128xbf16>
    %252 = vector.broadcast %251 : vector<1x128xbf16> to vector<16x128xbf16>
    %253 = arith.mulf %248, %252 : vector<16x128xbf16>
    %254 = arith.addf %247, %253 : vector<16x128xbf16>
    %255 = arith.extf %254 : vector<16x128xbf16> to vector<16x128xf32>
    %256 = arith.addf %227, %255 : vector<16x128xf32>
    %c29 = arith.constant 29 : index
    %c0_113 = arith.constant 0 : index
    %257 = vector.load %arg13[%c29, %c0_113] : memref<48x128xbf16, #tpu.memory_space<vmem>>, vector<16x128xbf16>
    %c28_114 = arith.constant 28 : index
    %c0_115 = arith.constant 0 : index
    %258 = vector.load %arg7[%c28_114, %c0_115] : memref<31x128xbf16, #tpu.memory_space<vmem>>, vector<1x128xbf16>
    %259 = vector.shape_cast %258 : vector<1x128xbf16> to vector<128xbf16>
    %260 = vector.shape_cast %259 : vector<128xbf16> to vector<1x128xbf16>
    %261 = vector.broadcast %260 : vector<1x128xbf16> to vector<16x128xbf16>
    %262 = arith.mulf %257, %261 : vector<16x128xbf16>
    %c30 = arith.constant 30 : index
    %c0_116 = arith.constant 0 : index
    %263 = vector.load %arg13[%c30, %c0_116] : memref<48x128xbf16, #tpu.memory_space<vmem>>, vector<16x128xbf16>
    %c29_117 = arith.constant 29 : index
    %c0_118 = arith.constant 0 : index
    %264 = vector.load %arg7[%c29_117, %c0_118] : memref<31x128xbf16, #tpu.memory_space<vmem>>, vector<1x128xbf16>
    %265 = vector.shape_cast %264 : vector<1x128xbf16> to vector<128xbf16>
    %266 = vector.shape_cast %265 : vector<128xbf16> to vector<1x128xbf16>
    %267 = vector.broadcast %266 : vector<1x128xbf16> to vector<16x128xbf16>
    %268 = arith.mulf %263, %267 : vector<16x128xbf16>
    %269 = arith.addf %262, %268 : vector<16x128xbf16>
    %c31 = arith.constant 31 : index
    %c0_119 = arith.constant 0 : index
    %270 = vector.load %arg13[%c31, %c0_119] : memref<48x128xbf16, #tpu.memory_space<vmem>>, vector<16x128xbf16>
    %c30_120 = arith.constant 30 : index
    %c0_121 = arith.constant 0 : index
    %271 = vector.load %arg7[%c30_120, %c0_121] : memref<31x128xbf16, #tpu.memory_space<vmem>>, vector<1x128xbf16>
    %272 = vector.shape_cast %271 : vector<1x128xbf16> to vector<128xbf16>
    %273 = vector.shape_cast %272 : vector<128xbf16> to vector<1x128xbf16>
    %274 = vector.broadcast %273 : vector<1x128xbf16> to vector<16x128xbf16>
    %275 = arith.mulf %270, %274 : vector<16x128xbf16>
    %276 = arith.addf %269, %275 : vector<16x128xbf16>
    %277 = arith.extf %276 : vector<16x128xbf16> to vector<16x128xf32>
    %278 = arith.addf %256, %277 : vector<16x128xf32>
    %c0_122 = arith.constant 0 : index
    %c0_123 = arith.constant 0 : index
    %279 = vector.load %arg8[%c0_122, %c0_123] : memref<1x128xf32, #tpu.memory_space<vmem>>, vector<1x128xf32>
    %280 = vector.broadcast %279 : vector<1x128xf32> to vector<16x128xf32>
    %281 = arith.addf %278, %280 : vector<16x128xf32>
    %282 = arith.negf %281 : vector<16x128xf32>
    %283 = math.exp %282 : vector<16x128xf32>
    %cst_124 = arith.constant 1.000000e+00 : f32
    %284 = vector.broadcast %cst_124 : f32 to vector<16x128xf32>
    %285 = arith.addf %284, %283 : vector<16x128xf32>
    %286 = arith.divf %284, %285 : vector<16x128xf32>
    %287 = arith.mulf %281, %286 : vector<16x128xf32>
    %288 = arith.truncf %287 : vector<16x128xf32> to vector<16x128xbf16>
    %c0_125 = arith.constant 0 : index
    %c0_126 = arith.constant 0 : index
    %289 = vector.load %arg9[%c0_125, %c0_126] : memref<128x128xbf16, #tpu.memory_space<vmem>>, vector<128x128xbf16>
    %cst_127 = arith.constant dense<0.000000e+00> : vector<16x128xf32>
    %290 = tpu.matmul %288, %289, %cst_127 {dimension_numbers = #tpu.dot_dimension_numbers<[1], [0], [0], [1], [0, 0, 1, 1], [], []>} : vector<16x128xbf16>, vector<128x128xbf16>, vector<16x128xf32> -> vector<16x128xf32>
    %c0_128 = arith.constant 0 : index
    %c0_129 = arith.constant 0 : index
    %291 = vector.load %arg10[%c0_128, %c0_129] : memref<1x128xf32, #tpu.memory_space<vmem>>, vector<1x128xf32>
    %292 = vector.broadcast %291 : vector<1x128xf32> to vector<16x128xf32>
    %293 = arith.addf %290, %292 : vector<16x128xf32>
    %c0_130 = arith.constant 0 : index
    %c0_131 = arith.constant 0 : index
    %c0_132 = arith.constant 0 : index
    %294 = vector.load %arg11[%c0_130, %c0_131, %c0_132] : memref<1x16x128xf32, #tpu.memory_space<vmem>>, vector<1x16x128xf32>
    %295 = vector.shape_cast %294 : vector<1x16x128xf32> to vector<16x128xf32>
    %296 = vector.shape_cast %293 : vector<16x128xf32> to vector<1x16x128xf32>
    tpu.vector_store %arg11[%c0_130, %c0_131, %c0_132], %296 {strides = array<i32>} : memref<1x16x128xf32, #tpu.memory_space<vmem>>, vector<1x16x128xf32>,
    return
  }
  func.func @transform_1(%arg0: i32, %arg1: i32) -> (i32, i32) {
    %c0_i32 = arith.constant 0 : i32
    %c0_i32_0 = arith.constant 0 : i32
    %c0_i32_1 = arith.constant 0 : i32
    return %c0_i32, %c0_i32_0 : i32, i32
  }
  func.func @transform_2(%arg0: i32, %arg1: i32) -> (i32, i32) {
    %c0_i32 = arith.constant 0 : i32
    %c0_i32_0 = arith.constant 0 : i32
    %c0_i32_1 = arith.constant 0 : i32
    return %c0_i32, %c0_i32_0 : i32, i32
  }
  func.func @transform_3(%arg0: i32, %arg1: i32) -> (i32, i32) {
    %c0_i32 = arith.constant 0 : i32
    %c0_i32_0 = arith.constant 0 : i32
    %c0_i32_1 = arith.constant 0 : i32
    return %c0_i32, %c0_i32_0 : i32, i32
  }
  func.func @transform_4(%arg0: i32, %arg1: i32) -> (i32, i32) {
    %c0_i32 = arith.constant 0 : i32
    %c0_i32_0 = arith.constant 0 : i32
    %c0_i32_1 = arith.constant 0 : i32
    return %c0_i32, %c0_i32_0 : i32, i32
  }
  func.func @transform_5(%arg0: i32, %arg1: i32) -> (i32, i32) {
    %c0_i32 = arith.constant 0 : i32
    %c0_i32_0 = arith.constant 0 : i32
    %c0_i32_1 = arith.constant 0 : i32
    return %c0_i32, %c0_i32_0 : i32, i32
  }
  func.func @transform_6(%arg0: i32, %arg1: i32) -> (i32, i32) {
    %c0_i32 = arith.constant 0 : i32
    %c0_i32_0 = arith.constant 0 : i32
    %c0_i32_1 = arith.constant 0 : i32
    return %c0_i32, %c0_i32_0 : i32, i32
  }
  func.func @transform_7(%arg0: i32, %arg1: i32) -> (i32, i32) {
    %c0_i32 = arith.constant 0 : i32
    %c0_i32_0 = arith.constant 0 : i32
    %c0_i32_1 = arith.constant 0 : i32
    return %c0_i32, %c0_i32_0 : i32, i32
  }
  func.func @transform_8(%arg0: i32, %arg1: i32) -> (i32, i32) {
    %c0_i32 = arith.constant 0 : i32
    %c0_i32_0 = arith.constant 0 : i32
    %c0_i32_1 = arith.constant 0 : i32
    return %c0_i32, %c0_i32_0 : i32, i32
  }
  func.func @transform_9(%arg0: i32, %arg1: i32) -> (i32, i32, i32) {
    %c0_i32 = arith.constant 0 : i32
    %c0_i32_0 = arith.constant 0 : i32
    return %arg0, %arg1, %c0_i32 : i32, i32, i32
  }
}

</mosaic_0001>

<bundles_post_ra>
// kernel: tpu_custom_call.1
= control target key start
LH: loop header
LB: loop body
LE: loop exit
PB: predicated region body
PF: predicated region fallthrough
CT: control target
= control target key end

     0   :  { %s3937_s0 = inlined_call_operand.hbm [shape: bf16[2,48,128], index: 0, kind: input, shape index: {}]   ;;  %s3938_s1 = inlined_call_operand.hbm [shape: bf16[128,128], index: 1, kind: input, shape index: {}]   ;;  %s3939_s2 = inlined_call_operand.hbm [shape: bf16[128,128], index: 2, kind: input, shape index: {}]   ;;  %s3940_s3 = inlined_call_operand.vmem [shape: f32[1,128], index: 3, kind: input, shape index: {}]   ;;  %s3941_s4 = inlined_call_operand.vmem [shape: f32[1,128], index: 4, kind: input, shape index: {}]   ;;  %s3942_s5 = inlined_call_operand.hbm [shape: bf16[31,128], index: 5, kind: input, shape index: {}]   ;;  %s3943_s6 = inlined_call_operand.vmem [shape: f32[1,128], index: 6, kind: input, shape index: {}]   ;;  %s3944_s7 = inlined_call_operand.hbm [shape: bf16[128,128], index: 7, kind: input, shape index: {}]   ;;  %s3945_s8 = inlined_call_operand.vmem [shape: f32[1,128], index: 8, kind: input, shape index: {}]   ;;  %s3946_s9 = inlined_call_operand.hbm [shape: f32[2,8,128], index: 9, kind: output, shape index: {}]  }
   0x1   :  { %3998 = sst [smem:[#allocation62_spill]] %s3939_s2 }
   0x2   :  { %14 = vsyncpa [#allocation6], 0 }
   0x3   :  { %15 = vsyncpa [#allocation9], 0 }
   0x4   :  { %16 = vsyncpa [#allocation12], 0 }
   0x5   :  { %17 = vsyncpa [#allocation7], 0 }
   0x6   :  { %19 = vsyncpa [#allocation7 + $0x1], 0  ;;  %s3050_s30 = smov 0   ;;  %s3052_s10 = smov 0  }
   0x7   :  { %s3054_s11 = smov 0   ;;  %s3056_s12 = smov 0  }
   0x8   :  { %s3058_s13 = smov 0   ;;  %s3060_s14 = smov 0  }
   0x9 LB: > { %3999 = sst [smem:[#allocation25_spill]] %s2981_s13  ;;  %s2388_s15 = sadd.s32 4294967295, %s2985_s14   ;;  %s2985_s14 = sphi %s3060_s14, %s25_s14   ;;  %s2981_s13 = sphi %s3058_s13, %s4101_s13   ;;  %s2977_s12 = sphi %s3056_s12, %s4100_s12   ;;  %s2973_s11 = sphi %s3054_s11, %s4104_s11   ;;  %s2969_s10 = sphi %s3052_s10, %s4103_s10   ;;  %s2965_s30 = sphi %s3050_s30, %s4102_s30  }
   0xa   : > { %s2389_s16 = sadd.s32 4294967294, %s2985_s14   ;;  %s37_s17 = sadd.s32 1, %s2981_s13 }
   0xb   : > { %s214_s18 = sadd.s32 1, %s2973_s11  ;;  %p39_p0 = scmp.ge.s32.totalorder %s37_s17, 2 }
   0xc   : > { %p224_p1 = scmp.ne.s32.totalorder %s2973_s11, %s2969_s10  ;;  %p225_p2 = scmp.eq.s32.totalorder %s2388_s15, 1 }
   0xd   : > { %p230_p3 = scmp.ne.s32.totalorder %s2969_s10, %s2965_s30  ;;  %s4106_s17 = smov (%p39_p0, %s37_s17), 0 }
   0xe   : > { %4000 = sst [smem:[#allocation26_spill]] %s4106_s17  ;;  %p3090_p4 = por %p225_p2, %p224_p1 }
   0xf   : > { %p231_p5 = scmp.eq.s32.totalorder %s2389_s16, 1  ;;  %s209_s20 = ssub.s32 %s2981_s13, %s4106_s17 }
  0x10   : > { %p2390_p6 = scmp.ge.s32.totalorder %s2985_s14, 1  ;;  %p212_p7 = scmp.eq.s32.totalorder %s209_s20, 0 }
  0x11   : > { %p3097_p8 = por %p231_p5, %p230_p3  ;;  %p238_p9 = scmp.lt.s32.totalorder %s2985_s14, 3 }
  0x12   : > { %s3103_s22 = scalar_select %p212_p7, %s2973_s11, %s214_s18  }
  0x13   : > { %p3105_p10 = pnand %p2390_p6, %p238_p9  ;;  %p3109_p11 = scmp.eq.s32.totalorder %s2388_s15, 0 }
  0x14   : > { %s2987_s25 = smov [#allocation8]   ;;  %s2988_s28 = smov [#allocation5]  }
  0x15   : > { %p2644_p12 = pneg %p3105_p10  ;;  %s263_s26 = sshll.u32 %s2987_s25, 4  ;;  %s264_s26 = int_to_ptr.vmem [resolvable:$true] %s263_s26 }
  0x16   : > { %s250_s29 = sshll.u32 %s2988_s28, 4  ;;  %s2784_s15 = scalar_lea.vmem %s264_s26, 1024  ;;  %s251_s29 = int_to_ptr.vmem [resolvable:$true] %s250_s29 }
  0x17   : > { %p3117_p13 = pnand %p3109_p11, %p2644_p12  ;;  %p2785_p1 = scmp.ne.s32.totalorder %s264_s26, %s2784_s15 }
  0x18   : > { %p2792_p5 = scmp.lt.s32.totalorder %s264_s26, %s264_s26  ;;  %p2793_p6 = scmp.lt.s32.totalorder %s2784_s15, %s2784_s15 }
  0x19   : > { %p2775_p0 = pneg %p3117_p13 }
  0x1a   : > { %p2794_p7 = por %p2793_p6, %p2792_p5 }
  0x1b   : > { %p2787_p2 = pnand %p2785_p1, %p2775_p0 }
  0x1d   : > { %p2788_p3 = pneg %p2787_p2 }
  0x1f   : > { %p2795_p9 = pnand %p2794_p7, %p2788_p3 }
  0x21   : > { %2798 = shalt.err (!%p2795_p9)
}
  0x22   : > { %s2989_s16 = smov 64   ;;  %s2990_s18 = smov 4  }
  0x23   : > { %s4006_s2 = sld [smem:[#allocation62_spill]]  ;;  %s2810_s28 = scalar_lea.vmem %s251_s29, 1024 }
  0x24   : > { %p2811_p12 = scmp.ne.s32.totalorder %s251_s29, %s2810_s28  ;;  %p2818_p3 = scmp.lt.s32.totalorder %s251_s29, %s251_s29 }
  0x25   : > { %p2819_p5 = scmp.lt.s32.totalorder %s2810_s28, %s2810_s28 }
  0x26   : > { %p2813_p1 = pnand %p2811_p12, %p2775_p0 }
  0x27   : > { %p2820_p6 = por %p2819_p5, %p2818_p3 }
  0x28   : > { %p2814_p2 = pneg %p2813_p1 }
  0x29   : > { %2650 = dma.hbm_to_vmem [thread:$0]  (!%p3117_p13), %s4006_s2, 1024, %s264_s26, [#allocation9], %s2989_s16, %s2989_s16, %s2990_s18  }
  0x2a   : > { %p2821_p7 = pnand %p2820_p6, %p2814_p2 }
  0x2c   : > { %2824 = shalt.err (!%p2821_p7)
}
  0x2d   : > { %2647 = dma.hbm_to_vmem [thread:$0]  (!%p3117_p13), %s3938_s1, 1024, %s251_s29, [#allocation6], %s2989_s16, %s2989_s16, %s2990_s18  }
  0x2e   : > { %s2991_s26 = smov [#allocation10]   ;;  %s2992_s2 = smov [#allocation11]  }
  0x2f   : > { %s282_s25 = sshll.u32 %s2991_s26, 4  ;;  %s298_s17 = sshll.u32 %s2992_s2, 4  ;;  %s283_s25 = int_to_ptr.vmem [resolvable:$true] %s282_s25  ;;  %s299_s17 = int_to_ptr.vmem [resolvable:$true] %s298_s17 }
  0x30   : > { %s2836_s13 = scalar_lea.vmem %s283_s25, 256  ;;  %p2844_p2 = scmp.lt.s32.totalorder %s283_s25, %s283_s25 }
  0x31   : > { %p2837_p9 = scmp.ne.s32.totalorder %s283_s25, %s2836_s13  ;;  %p2845_p3 = scmp.lt.s32.totalorder %s2836_s13, %s2836_s13 }
  0x33   : > { %p2839_p12 = pnand %p2837_p9, %p2775_p0  ;;  %p2846_p5 = por %p2845_p3, %p2844_p2 }
  0x35   : > { %p2840_p1 = pneg %p2839_p12 }
  0x37   : > { %p2847_p6 = pnand %p2846_p5, %p2840_p1 }
  0x39   : > { %2850 = shalt.err (!%p2847_p6)
}
  0x3a   : > { %2653 = dma.hbm_to_vmem [thread:$0]  (!%p3117_p13), %s3942_s5, 256, %s283_s25, [#allocation9], %s2989_s16, %s2989_s16, %s2990_s18  }
  0x3b   : > { %s2862_s2 = scalar_lea.vmem %s299_s17, 1024  ;;  %p2870_p2 = scmp.lt.s32.totalorder %s299_s17, %s299_s17 }
  0x3c   : > { %p2863_p7 = scmp.ne.s32.totalorder %s299_s17, %s2862_s2  ;;  %p2871_p1 = scmp.lt.s32.totalorder %s2862_s2, %s2862_s2 }
  0x3e   : > { %p2865_p9 = pnand %p2863_p7, %p2775_p0  ;;  %p2872_p3 = por %p2871_p1, %p2870_p2 }
  0x40   : > { %p2866_p12 = pneg %p2865_p9 }
  0x42   : > { %p2873_p5 = pnand %p2872_p3, %p2866_p12 }
  0x44   : > { %2876 = shalt.err (!%p2873_p5)
}
  0x45   : > { %2656 = dma.hbm_to_vmem [thread:$0]  (!%p3117_p13), %s3944_s7, 1024, %s299_s17, [#allocation12], %s2989_s16, %s2989_s16, %s2990_s18  }
  0x46   : > { %317 = sbr.rel (%p3105_p10) target bundleno = 747 (0x2eb), region = 52 }
  0x4b   : > { %2946 = dma.done.wait (%p3109_p11), [#allocation6], 1024  }
  0x4c   : > { %2948 = vsyncadd (%p3109_p11), [#allocation6], 4294966272 }
  0x4d   : > { %2950 = dma.done.wait (%p3109_p11), [#allocation9], 1280  }
  0x4e   : > { %2952 = vsyncadd (%p3109_p11), [#allocation9], 4294966016 }
  0x4f   : > { %2954 = dma.done.wait (%p3109_p11), [#allocation12], 1024  }
  0x50   : > { %2956 = vsyncadd (%p3109_p11), [#allocation12], 4294966272  ;;  %s3949_s17 = sand.u32 1, %s2969_s10   ;;  %s2504_s23 = smul.u32 384, %s2977_s12 }
  0x51   : > { %s2400_s27 = sshll.u32 %s3949_s17, 4  ;;  %s2993_s26 = smov [#allocation2]  }
  0x52   : > { %s381_s20 = scalar_lea.hbm %s3937_s0, %s2504_s23  ;;  %s389_s25 = sshll.u32 %s2993_s26, 4  ;;  %s390_s25 = int_to_ptr.vmem [resolvable:$true] %s389_s25 }
  0x53   : > { %s2877_s29 = scalar_lea.hbm %s381_s20, 384  ;;  %s2879_s24 = scalar_lea.hbm %s3937_s0, 768 }
  0x54   : > { %p2878_p10 = scmp.ne.s32.totalorder %s381_s20, %s2877_s29  ;;  %p2880_p11 = scmp.lt.s32.totalorder %s381_s20, %s3937_s0 }
  0x55   : > { %p2881_p13 = scmp.lt.s32.totalorder %s2879_s24, %s2877_s29 }
  0x57   : > { %p2882_p0 = por %p2881_p13, %p2880_p11 }
  0x59   : > { %p2883_p6 = pnand %p2882_p0, %p2878_p10 }
  0x5b   : > { %2886 = shalt.err (!%p2883_p6)  }
  0x5c   : > { %s2887_s17 = scalar_lea.vmem %s390_s25, 384  ;;  %s2891_s23 = scalar_lea.vmem %s390_s25, 768 }
  0x5d   : > { %p2888_p7 = scmp.ne.s32.totalorder %s390_s25, %s2887_s17  ;;  %p2892_p9 = scmp.lt.s32.totalorder %s390_s25, %s390_s25 }
  0x5e   : > { %p2893_p12 = scmp.lt.s32.totalorder %s2891_s23, %s2887_s17 }
  0x60   : > { %p2894_p2 = por %p2893_p12, %p2892_p9 }
  0x62   : > { %p2895_p1 = pnand %p2894_p2, %p2888_p7 }
  0x64   : > { %2898 = shalt.err (!%p2895_p1)  }
  0x65   : > { %392 = dma.hbm_to_vmem [thread:$0]  %s381_s20, 384, %s390_s25, [#allocation4] }
  0x66   : > { %s3194_s16 = scalar_lea.vmem [#allocation13], %s2400_s27 }
  0x67   : > { %2957 = dma.done.wait [#allocation4], 384 }
  0x68   : > { %2958 = vsyncadd [#allocation4], 4294966912  ;;  %v3950_v0 = vmov 0.0   ;;  %vm2995_vm0 = vmmov 0   ;;  %v2730_v1 = vld [vmem:[#allocation8 + $0x38] sm:$0xff]   ;;  %v2731_v2 = vld [vmem:[#allocation8 + $0x30] sm:$0xff]   ;;  %v880_v31 = vlaneseq }
  0x69   : > { %2579 = vmatprep.subr.bf16.mxu1 %v3950_v0  ;;  %2551 = vmatprep.subr.bf16.mxu0 %v3950_v0  ;;  %v2732_v3 = vld [vmem:[#allocation8 + $0x28] sm:$0xff]   ;;  %v2737_v4 = vld [vmem:[#allocation5 + $0x38] sm:$0xff]   ;;  %v2739_v5 = vld [vmem:[#allocation5 + $0x30] sm:$0xff]   ;;  %v2996_v19 = vmov 0.0|0.0   ;;  %vm906_vm1 = vsmask.f32 3328 }
  0x6a   : > { %2595 = vmatprep.mubr.msk.bf16.mxu1 %vm2995_vm0, %v3950_v0  ;;  %2567 = vmatprep.mubr.msk.bf16.mxu0 %vm2995_vm0, %v3950_v0  ;;  %v2733_v6 = vld [vmem:[#allocation8 + $0x20] sm:$0xff]   ;;  %v2741_v7 = vld [vmem:[#allocation5 + $0x28] sm:$0xff]   ;;  %v2734_v8 = vld [vmem:[#allocation8 + $0x18] sm:$0xff]   ;;  %v2430_v20 = vcombine.low %v2996_v19, %v2996_v19  ;;  %v2431_v21 = vcombine.high %v2996_v19, %v2996_v19  ;;  %v881_v34 = vshrl.u32 %v880_v31, 7  ;;  %vm907_vm2 = vsmask.f32 7440 }
  0x6b   : > { %2580 = vmatpush3.bf16.msra.mxu1 %v2730_v1  ;;  %2552 = vmatpush3.bf16.msra.mxu0 %v2737_v4  ;;  %v2735_v9 = vld [vmem:[#allocation8 + $0x10] sm:$0xff]   ;;  %v2742_v10 = vld [vmem:[#allocation5 + $0x20] sm:$0xff]   ;;  %v2744_v11 = vld [vmem:[#allocation5 + $0x18] sm:$0xff]   ;;  %vm962_vm3 = vcmask 1042432   ;;  %vm963_vm4 = vcmask 1046532   ;;  %vm1181_vm10 = vcmask 1043456  }
  0x6c   : > { %2581 = vmatprep.subr.bf16.mxu1 %v3950_v0  ;;  %2553 = vmatprep.subr.bf16.mxu0 %v3950_v0  ;;  %v2736_v12 = vld [vmem:[#allocation8 + $0x8] sm:$0xff]   ;;  %v2745_v13 = vld [vmem:[#allocation5 + $0x10] sm:$0xff]   ;;  %v2738_v14 = vld [vmem:[#allocation8] sm:$0xff]   ;;  %834 = vst [vmem:[#allocation3] sm:$0xf] %v2430_v20  ;;  %v3234_v38 = vsub.s32 0, %v881_v34 }
  0x6d   : > { %v2740_v15 = vld [vmem:[#allocation2] sm:$0xff]   ;;  %v2746_v16 = vld [vmem:[#allocation5 + $0x8] sm:$0xff]   ;;  %v2747_v17 = vld [vmem:[#allocation5] sm:$0xff]   ;;  %835 = vst [vmem:[#allocation3 + $0x4] sm:$0xf] %v2431_v21  ;;  %v3236_v41 = vsub.s32 2, %v881_v34 }
  0x6e   : > { %v2743_v18 = vld [vmem:[#allocation2 + $0x8] sm:$0xff]   ;;  %838 = vst [vmem:[#allocation3 + $0x10] sm:$0xf] %v2430_v20  ;;  %839 = vst [vmem:[#allocation3 + $0x14] sm:$0xf] %v2431_v21  ;;  %v2748_v22 = vld [vmem:[#allocation11 + $0x38] sm:$0xff]  }
  0x6f   : > { %2582 = vmatpush3.bf16.msra.mxu1 %v2731_v2  ;;  %2554 = vmatpush3.bf16.msra.mxu0 %v2739_v5  ;;  %v2753_v23 = vld [vmem:[#allocation2 + $0x10] sm:$0xff]   ;;  %v2749_v24 = vld [vmem:[#allocation11 + $0x30] sm:$0xff]   ;;  %v2750_v25 = vld [vmem:[#allocation11 + $0x28] sm:$0xff]   ;;  %v3239_v44 = vsub.s32 1, %v881_v34  ;;  %v3266_v5 = vsub.s32 3, %v881_v34  ;;  %s4099_s2 = sand.u32 1, %s2969_s10  }
  0x70   : > { %2583 = vmatprep.subr.bf16.mxu1 %v3950_v0  ;;  %2555 = vmatprep.subr.bf16.mxu0 %v3950_v0  ;;  %v2751_v26 = vld [vmem:[#allocation11 + $0x20] sm:$0xff]   ;;  %v2752_v27 = vld [vmem:[#allocation11 + $0x18] sm:$0xff]   ;;  %v2754_v28 = vld [vmem:[#allocation11 + $0x10] sm:$0xff]   ;;  %vm994_vm6 = vsmask.f32 2304  ;;  %s3898_s24 = scalar_lea.sflag [#allocation7], %s4099_s2 }
  0x71   : > { %v2755_v29 = vld [vmem:[#allocation11 + $0x8] sm:$0xff]   ;;  %v2756_v30 = vld [vmem:[#allocation11] sm:$0xff]   ;;  %v876_v32 = vld [vmem:[#allocation10] sm:$0x1]  ;;  %vm995_vm7 = vsmask.f32 6416 }
  0x72   : > { %v1039_v33 = vld [vmem:[#allocation10] sm:$0x4]  ;;  %v892_v35 = vshrl.u32 %v876_v32, 16  ;;  %v944_v36 = vld [vmem:[#allocation10] sm:$0x2]  ;;  %v878_v57 = vpack.i.b16 %v876_v32, %v876_v32  ;;  %vm3304_vm5 = vmor %vm906_vm1, %vm907_vm2 }
  0x73   : > { %2584 = vmatpush3.bf16.msra.mxu1 %v2732_v3  ;;  %2556 = vmatpush3.bf16.msra.mxu0 %v2741_v7  ;;  %v1055_v37 = vshrl.u32 %v1039_v33, 16  ;;  %v980_v40 = vshrl.u32 %v944_v36, 16  ;;  %v3242_v47 = vld [vmem:[#allocation3] sm:$0xe]  ;;  %v946_v49 = vpack.i.b16 %v944_v36, %v944_v36  ;;  %v1105_v55 = vld [vmem:[#allocation10] sm:$0x8]  ;;  %v1041_v60 = vpack.i.b16 %v1039_v33, %v1039_v33  ;;  %vm3320_vm8 = vmor %vm962_vm3, %vm963_vm4 }
  0x74   : > { %2585 = vmatprep.subr.bf16.mxu1 %v3950_v0  ;;  %2557 = vmatprep.subr.bf16.mxu0 %v3950_v0  ;;  %v893_v39 = vpack.i.b16 %v892_v35, %v892_v35  ;;  %v3251_v53 = vld [vmem:[#allocation3] sm:$0x8]  ;;  %v3255_v56 = vld [vmem:[#allocation3 + $0x4] sm:$0xf]  ;;  %v1137_v2 = vshrl.u32 %v1105_v55, 16  ;;  %v1107_v4 = vpack.i.b16 %v1105_v55, %v1105_v55  ;;  %vm3336_vm9 = vmor %vm994_vm6, %vm995_vm7 }
  0x75   : > { %v1056_v42 = vpack.i.b16 %v1055_v37, %v1055_v37  ;;  %v981_v45 = vpack.i.b16 %v980_v40, %v980_v40  ;;  %v3253_v54 = vld [vmem:[#allocation3] sm:$0xc]  ;;  %4007 = vst [vmem:[#allocation27_spill] sm:$0xff] %v3255_v56  ;;  %v951_v58 = vrot.slane %v946_v49, %v3239_v44  ;;  %vm2137_vm11 = vsmask.f32 7424 }
  0x76   : > { %v898_v43 = vrot.slane %v893_v39, %v3234_v38 }
  0x77   : > { %2586 = vmatpush3.bf16.msra.mxu1 %v2733_v6  ;;  %2558 = vmatpush3.bf16.msra.mxu0 %v2742_v10  ;;  %v1061_v46 = vrot.slane %v1056_v42, %v3236_v41  ;;  %v986_v50 = vrot.slane %v981_v45, %v3239_v44  ;;  %v883_v6 = vrot.slane %v878_v57, %v3234_v38 }
  0x78   : > { %2587 = vmatprep.subr.bf16.mxu1 %v3950_v0  ;;  %2559 = vmatprep.subr.bf16.mxu0 %v3950_v0  ;;  %v3244_v48 = vcombine.low %v898_v43, %v898_v43  ;;  %v3269_v7 = vcombine.low %v951_v58, %v951_v58  ;;  %v1259_v58 = vld [vmem:[#allocation10 + $0x4] sm:$0x2] }
  0x79   : > { %v3249_v52 = vcombine.low %v1061_v46, %v1061_v46  ;;  %v3258_v59 = vcombine.low %v986_v50, %v986_v50  ;;  %v3275_v19 = vcombine.low %v883_v6, %v883_v6 }
  0x7a   : > { %v903_v51 = vmul.bf16 %v3244_v48, %v3242_v47  ;;  %v904_v3 = vmul.bf16 %v3244_v48, %v3255_v56  ;;  %v957_v21 = vmul.bf16 %v3269_v7, %v3255_v56  ;;  %v956_v43 = vmul.bf16 %v3269_v7, %v3242_v47 }
  0x7b   : > { %2588 = vmatpush3.bf16.msra.mxu1 %v2734_v8  ;;  %2560 = vmatpush3.bf16.msra.mxu0 %v2744_v11  ;;  %v1066_v63 = vmul.bf16 %v3249_v52, %v3251_v53  ;;  %v991_v1 = vmul.bf16 %v3258_v59, %v3253_v54  ;;  %v1046_v8 = vrot.slane %v1041_v60, %v3236_v41 }
  0x7c   : > { %2589 = vmatprep.subr.bf16.mxu1 %v3950_v0  ;;  %2561 = vmatprep.subr.bf16.mxu0 %v3950_v0  ;;  %v910_v61 = vshrl.u32 %v903_v51, 16  ;;  %v913_v62 = vshll.u32 %v903_v51, 16  ;;  %v923_v20 = vshrl.u32 %v904_v3, 16  ;;  %v3300_v51 = vrot.slane %v957_v21, 5 }
  0x7d   : > { %v1070_v11 = vshrl.u32 %v1066_v63, 16 }
  0x7e   : > { %v915_v10 = vrot.slane %v913_v62, 5  ;;  %v925_v46 = vrot.slane %v923_v20, 4  ;;  %4009 = vst [vmem:[#allocation29_spill] sm:$0xff] %v3300_v51 }
  0x7f   : > { %2590 = vmatpush3.bf16.msra.mxu1 %v2735_v9  ;;  %2562 = vmatpush3.bf16.msra.mxu0 %v2745_v13  ;;  %v912_v9 = vrot.slane %v910_v61, 4  ;;  %v998_v13 = vshrl.u32 %v991_v1, 16 }
  0x80   : > { %2591 = vmatprep.subr.bf16.mxu1 %v3950_v0  ;;  %2563 = vmatprep.subr.bf16.mxu0 %v3950_v0 }
  0x83   : > { %2592 = vmatpush3.bf16.msra.mxu1 %v2736_v12  ;;  %2564 = vmatpush3.bf16.msra.mxu0 %v2746_v16  ;;  %v1073_v12 = vshll.u32 %v1066_v63, 16  ;;  %v919_v16 = vshll.u32 %v904_v3, 16 }
  0x84   : > { %2593 = vmatprep.subr.bf16.mxu1 %v3950_v0  ;;  %2565 = vmatprep.subr.bf16.mxu0 %v3950_v0 }
  0x85   : > { %v3288_v33 = vrot.slane %v919_v16, 5 }
  0x87   : > { %2594 = vmatpush3.bf16.msra.mxu1 %v2738_v14  ;;  %2566 = vmatpush3.bf16.msra.mxu0 %v2747_v17  ;;  %v1001_v14 = vshll.u32 %v991_v1, 16  ;;  %v1067_v17 = vmul.bf16 %v3249_v52, %v3255_v56  ;;  %v2446_v1 = vrot.slane %v956_v43, 9  ;;  %v3350_v43 = vld [vmem:[#allocation10 + $0x4] sm:$0x8] }
  0x88   : > { %2607 = vmatprep.subr.bf16.mxu0 %v3950_v0 }
  0x89   : > { %v1003_v31 = vrot.slane %v1001_v14, 6  ;;  %v1079_v55 = vshll.u32 %v1067_v17, 16  ;;  %v1083_v62 = vshrl.u32 %v1067_v17, 16 }
  0x8a   : > { %2596 = vmatmul.mubr.bf16.vlgmr.msra.gmra.mxu1 %v2740_v15  ;;  %2568 = vmatmul.mubr.bf16.vlgmr.msra.gmra.mxu0 %v2740_v15  ;;  %v1138_v15 = vpack.i.b16 %v1137_v2, %v1137_v2 }
  0x8b   : > { %2599 = vmatprep.mubr.msk.bf16.mxu1 %vm2995_vm0, %v3950_v0  ;;  %2571 = vmatprep.mubr.msk.bf16.mxu0 %vm2995_vm0, %v3950_v0  ;;  %v1085_v16 = vrot.slane %v1083_v62, 4 }
  0x8c   : > { %2608 = vmatpush3.bf16.msra.mxu0 %v2748_v22  ;;  %v992_v22 = vmul.bf16 %v3258_v59, %v3255_v56  ;;  %v1143_v32 = vrot.slane %v1138_v15, %v3266_v5 }
  0x8d   : > { %2609 = vmatprep.subr.bf16.mxu0 %v3950_v0 }
  0x8e   : > { %v1007_v36 = vshrl.u32 %v992_v22, 16  ;;  %v1010_v37 = vshll.u32 %v992_v22, 16  ;;  %v3298_v50 = vcombine.low %v1143_v32, %v1143_v32 }
  0x90   : > { %2610 = vmatpush3.bf16.msra.mxu0 %v2749_v24  ;;  %v916_v24 = vor.u32 %v915_v10, %v912_v9  ;;  %v1009_v47 = vrot.slane %v1007_v36, 5  ;;  %v1012_v61 = vrot.slane %v1010_v37, 6  ;;  %v1292_v9 = vshrl.u32 %v1259_v58, 16 }
  0x91   : > { %2611 = vmatprep.subr.bf16.mxu0 %v3950_v0  ;;  %v1081_v10 = vrot.slane %v1079_v55, 5  ;;  %v1416_v55 = vpack.i.b16 %v3350_v43, %v3350_v43 }
  0x92   : > { %2600 = vmatmul.mubr.bf16.gmra.mxu1 %v2743_v18  ;;  %2572 = vmatmul.mubr.bf16.gmra.mxu0 %v2743_v18  ;;  %v1112_v18 = vrot.slane %v1107_v4, %v3266_v5  ;;  %v917_v42 = vrot.slane %v916_v24, 4  ;;  %v1348_v4 = vld [vmem:[#allocation10 + $0x4] sm:$0x4]  ;;  %v3329_v20 = vor.u32 %v1012_v61, %v1009_v47 }
  0x93   : > { %2603 = vmatprep.mubr.msk.bf16.mxu1 %vm2995_vm0, %v3950_v0  ;;  %2575 = vmatprep.mubr.msk.bf16.mxu0 %vm2995_vm0, %v3950_v0  ;;  %v1364_v17 = vshrl.u32 %v1348_v4, 16  ;;  %v1086_v36 = vor.u32 %v1085_v16, %v1081_v10 }
  0x94   : > { %2612 = vmatpush3.bf16.msra.mxu0 %v2750_v25  ;;  %v3283_v25 = vcombine.low %v1046_v8, %v1046_v8  ;;  %v3290_v34 = vcombine.low %v1112_v18, %v1112_v18  ;;  %v922_v63 = vsel %vm3304_vm5, %v917_v42, %v3288_v33  ;;  %v1148_v8 = vmul.bf16 %v3298_v50, %v3255_v56 }
  0x95   : > { %2613 = vmatprep.subr.bf16.mxu0 %v3950_v0  ;;  %v968_v18 = vsel %vm3320_vm8, %v2446_v1, %v3300_v51  ;;  %4014 = vst [vmem:[#allocation30_spill] sm:$0xff] %v3329_v20  ;;  %v1365_v42 = vpack.i.b16 %v1364_v17, %v1364_v17  ;;  %v1502_v17 = vld [vmem:[#allocation10 + $0x8] sm:$0x1] }
  0x96   : > { %4008 = vst [vmem:[#allocation28_spill] sm:$0xff] %v3283_v25  ;;  %v1117_v3 = vmul.bf16 %v3290_v34, %v3251_v53  ;;  %v1051_v53 = vmul.bf16 %v3283_v25, %v3253_v54  ;;  %v1151_v54 = vshrl.u32 %v1148_v8, 16 }
  0x98   : > { %2614 = vmatpush3.bf16.msra.mxu0 %v2751_v26  ;;  %v1072_v26 = vrot.slane %v1070_v11, 4  ;;  %v1118_v11 = vmul.bf16 %v3290_v34, %v3255_v56  ;;  %v2451_v22 = vrot.slane %v1117_v3, 9 }
  0x99   : > { %2615 = vmatprep.subr.bf16.mxu0 %v3950_v0 }
  0x9a   : > { %2576 = vmatmul.mubr.bf16.gmra.mxu0 %v2753_v23  ;;  %2604 = vmatmul.mubr.bf16.gmra.mxu1 %v2753_v23  ;;  %v3281_v23 = vld [vmem:[#allocation10 + $0x4] sm:$0x1] }
  0x9b   : > { %2623 = vmatprep.mubr.msk.bf16.mxu0 %vm2995_vm0, %v3950_v0  ;;  %v1210_v35 = vshrl.u32 %v3281_v23, 16  ;;  %v1196_v39 = vpack.i.b16 %v3281_v23, %v3281_v23  ;;  %v926_v23 = vor.u32 %v925_v46, %v3288_v33  ;;  %v3348_v33 = vld [vmem:[#allocation10 + $0x8] sm:$0x4] }
  0x9c   : > { %2616 = vmatpush3.bf16.msra.mxu0 %v2752_v27  ;;  %v1075_v27 = vrot.slane %v1073_v12, 5  ;;  %v1672_v61 = vshrl.u32 %v3348_v33, 16 }
  0x9d   : > { %2617 = vmatprep.subr.bf16.mxu0 %v3950_v0  ;;  %v1211_v57 = vpack.i.b16 %v1210_v35, %v1210_v35  ;;  %v1201_v46 = vrot.slane %v1196_v39, %v3234_v38 }
  0x9e   : > { %v1076_v45 = vor.u32 %v1075_v27, %v1072_v26  ;;  %v1154_v26 = vshll.u32 %v1148_v8, 16  ;;  %v1293_v27 = vpack.i.b16 %v1292_v9, %v1292_v9  ;;  %v1370_v8 = vrot.slane %v1365_v42, %v3236_v41 }
  0x9f   : > { %v1216_v12 = vrot.slane %v1211_v57, %v3234_v38  ;;  %v1153_v57 = vrot.slane %v1151_v54, 5 }
  0xa0   : > { %2618 = vmatpush3.bf16.msra.mxu0 %v2754_v28  ;;  %v873_v28 = vld [vmem:[#allocation3] sm:$0xf]  ;;  %v1077_v2 = vrot.slane %v1076_v45, 4  ;;  %v1298_v47 = vrot.slane %v1293_v27, %v3239_v44 }
  0xa1   : > { %2619 = vmatprep.subr.bf16.mxu0 %v3950_v0  ;;  %v888_v40 = vmul.bf16 %v3275_v19, %v873_v28 }
  0xa2   : > { %v1082_v21 = vsel %vm3304_vm5, %v1077_v2, %v1081_v10  ;;  %v3380_v16 = vcombine.low %v1298_v47, %v1298_v47  ;;  %v3418_v47 = vld [vmem:[#allocation10 + $0xc] sm:$0x1] }
  0xa3   : > { %v940_v14 = vadd.bf16 %v922_v63, %v888_v40  ;;  %v1101_v37 = vadd.bf16 %v1082_v21, %v1051_v53  ;;  %v1209_v40 = vld [vmem:[#allocation3 + $0x4] sm:$0xe]  ;;  %v3360_v63 = vrot.slane %v926_v23, 4  ;;  %v3378_v53 = vcombine.low %v1201_v46, %v1201_v46 }
  0xa4   : > { %2620 = vmatpush3.bf16.msra.mxu0 %v2755_v29  ;;  %4023 = vst [vmem:[#allocation37_spill] sm:$0xff] %v3380_v16  ;;  %v1673_v21 = vpack.i.b16 %v1672_v61, %v1672_v61 }
  0xa5   : > { %2621 = vmatprep.subr.bf16.mxu0 %v3950_v0  ;;  %v976_v35 = vadd.bf16 %v968_v18, %v940_v14  ;;  %4022 = vst [vmem:[#allocation36_spill] sm:$0xff] %v3378_v53  ;;  %v1567_v18 = vld [vmem:[#allocation10 + $0x8] sm:$0x2] }
  0xa8   : > { %2622 = vmatpush3.bf16.msra.mxu0 %v2756_v30  ;;  %v1000_v30 = vrot.slane %v998_v13, 5  ;;  %v1261_v13 = vpack.i.b16 %v1259_v58, %v1259_v58  ;;  %v1156_v58 = vrot.slane %v1154_v26, 6 }
  0xaa   : > { %v1004_v49 = vor.u32 %v1003_v31, %v1000_v30  ;;  %v3343_v30 = vrot.slane %v1118_v11, 5  ;;  %v3345_v31 = vcombine.low %v1216_v12, %v1216_v12  ;;  %v1266_v32 = vrot.slane %v1261_v13, %v3239_v44 }
  0xab   : > { %v3372_v11 = vrot.slane %v1086_v36, 4  ;;  %v1421_v13 = vrot.slane %v1416_v55, %v3266_v5  ;;  %v3376_v14 = vor.u32 %v1156_v58, %v1153_v57  ;;  %v1518_v55 = vshrl.u32 %v1502_v17, 16 }
  0xac   : > { %v1005_v6 = vrot.slane %v1004_v49, 4  ;;  %4017 = vst [vmem:[#allocation31_spill] sm:$0xff] %v3343_v30  ;;  %v1126_v45 = vsel %vm3320_vm8, %v2451_v22, %v3343_v30  ;;  %v1350_v49 = vpack.i.b16 %v1348_v4, %v1348_v4  ;;  %v1221_v2 = vmul.bf16 %v3345_v31, %v1209_v40 }
  0xad   : > { %v3364_v3 = vcombine.low %v1266_v32, %v1266_v32  ;;  %4020 = vst [vmem:[#allocation34_spill] sm:$0xff] %v3372_v11  ;;  %4021 = vst [vmem:[#allocation35_spill] sm:$0xff] %v3376_v14  ;;  %v1600_v57 = vshrl.u32 %v1567_v18, 16 }
  0xae   : > { %v1014_v28 = vsel %vm3336_vm9, %v1005_v6, %v3329_v20  ;;  %v1134_v6 = vadd.bf16 %v1126_v45, %v1101_v37  ;;  %v1355_v12 = vrot.slane %v1350_v49, %v3236_v41  ;;  %v1225_v54 = vshrl.u32 %v1221_v2, 16  ;;  %v2415_v45 = vld [vmem:[%s3941_s4] ss:$0 sm:$0xff]  ;;  %v3397_v49 = vld [vmem:[#allocation3 + $0x4] sm:$0x8] }
  0xaf   : > { %4018 = vst [vmem:[#allocation32_spill] sm:$0xff] %v3364_v3  ;;  %v3366_v39 = vadd.bf16 %v1014_v28, %v976_v35  ;;  %v1228_v26 = vshll.u32 %v1221_v2, 16  ;;  %v1271_v27 = vmul.bf16 %v3364_v3, %v1209_v40  ;;  %v3384_v28 = vld [vmem:[#allocation3 + $0x4] sm:$0xc]  ;;  %v3390_v37 = vcombine.low %v1370_v8, %v1370_v8  ;;  %v1811_v20 = vld [vmem:[#allocation3 + $0x14] sm:$0x1] }
  0xb0   : > { %4024 = vst [vmem:[#allocation38_spill] sm:$0xff] %v3384_v28  ;;  %v1172_v35 = vadd.bf16 %v3376_v14, %v1134_v6  ;;  %v3395_v46 = vcombine.low %v1355_v12, %v1355_v12  ;;  %v3399_v40 = vcombine.low %v1421_v13, %v1421_v13  ;;  %v1303_v61 = vmul.bf16 %v3380_v16, %v3384_v28  ;;  %v2032_v3 = vld [vmem:[#allocation10 + $0xc] sm:$0x8] }
  0xb1   : > { %4019 = vst [vmem:[#allocation33_spill] sm:$0xff] %v3366_v39  ;;  %4025 = vst [vmem:[#allocation39_spill] sm:$0xff] %v3390_v37  ;;  %v1678_v2 = vrot.slane %v1673_v21, %v3236_v41  ;;  %v3406_v8 = vrot.slane %v1225_v54, 4  ;;  %v3410_v12 = vrot.slane %v1271_v27, 9  ;;  %v1569_v13 = vpack.i.b16 %v1567_v18, %v1567_v18  ;;  %v3420_v21 = vld [vmem:[#allocation10 + $0xc] sm:$0x4] }
  0xb2   : > { %4026 = vst [vmem:[#allocation40_spill] sm:$0xff] %v3395_v46  ;;  %v3414_v32 = vunpack.c.l.bf16 %v1172_v35  ;;  %v1375_v36 = vmul.bf16 %v3390_v37, %v3397_v49  ;;  %v1519_v27 = vpack.i.b16 %v1518_v55, %v1518_v55  ;;  %v1310_v4 = vshll.u32 %v1303_v61, 16 }
  0xb3   : > { %4027 = vst [vmem:[#allocation41_spill] sm:$0xff] %v3410_v12  ;;  %v3426_v10 = vcombine.low %v1678_v2, %v1678_v2  ;;  %v1574_v1 = vrot.slane %v1569_v13, %v3239_v44  ;;  %v1982_v29 = vshrl.u32 %v3420_v21, 16 }
  0xb4   : > { %4028 = vst [vmem:[#allocation42_spill] sm:$0xff] %v3414_v32 }
  0xb5   : > { %4029 = vst [vmem:[#allocation43_spill] sm:$0xff] %v3426_v10  ;;  %v3448_v18 = vcombine.low %v1574_v1, %v1574_v1  ;;  %v1983_v37 = vpack.i.b16 %v1982_v29, %v1982_v29 }
  0xb7   : > { %4030 = vst [vmem:[#allocation44_spill] sm:$0xff] %v3448_v18 }
 0x14a   : > { %v686_v62 = vpop.f32.mrf.mxu1  ;;  %v558_v58 = vpop.f32.mrf.mxu0 }
 0x14b   : > { %v1446_v62 = vshrl.u32 %v3350_v43, 16  ;;  %v1504_v43 = vpack.i.b16 %v1502_v17, %v1502_v17 }
 0x14c   : > { %v2597_v9 = vpop.f32.mrf.mxu1  ;;  %v2569_v58 = vpop.f32.mrf.mxu0 }
 0x14d   : > { %v3408_v9 = vrot.slane %v1228_v26, 5  ;;  %v1307_v58 = vshrl.u32 %v1303_v61, 16  ;;  %v1828_v26 = vshrl.u32 %v3418_v47, 16  ;;  %v1524_v61 = vrot.slane %v1519_v27, %v3234_v38 }
 0x14e   : > { %v689_v22 = vpop.f32.mrf.mxu1  ;;  %v561_v35 = vpop.f32.mrf.mxu0 }
 0x14f   : > { %v3412_v22 = vld [vmem:[#allocation10 + $0x8] sm:$0x8]  ;;  %v1509_v35 = vrot.slane %v1504_v43, %v3234_v38  ;;  %v3442_v28 = vrot.slane %v1307_v58, 5  ;;  %v1829_v39 = vpack.i.b16 %v1828_v26, %v1828_v26  ;;  %v1501_v58 = vld [vmem:[#allocation3 + $0x10] sm:$0x1] }
 0x150   : > { %v2598_v42 = vpop.f32.mrf.mxu1  ;;  %v1754_v17 = vshrl.u32 %v3412_v22, 16  ;;  %v2570_v55 = vpop.f32.mrf.mxu0  ;;  %v1724_v29 = vpack.i.b16 %v3412_v22, %v3412_v22 }
 0x151   : > { %v1566_v55 = vld [vmem:[#allocation3 + $0x10] sm:$0x3] }
 0x152   : > { %v694_v6 = vpop.f32.mrf.mxu1  ;;  %v3440_v0 = vpop.f32.mrf.mxu0  ;;  %v1755_v43 = vpack.i.b16 %v1754_v17, %v1754_v17  ;;  %v3459_v17 = vcombine.low %v1524_v61, %v1524_v61  ;;  %v1581_v1 = vmul.bf16 %v3448_v18, %v1566_v55  ;;  %v1834_v61 = vrot.slane %v1829_v39, %v3234_v38 }
 0x153   : > { %v695_v42 = vadd.f32 %v2415_v45, %v694_v6  ;;  %v1601_v45 = vpack.i.b16 %v1600_v57, %v1600_v57  ;;  %v1379_v57 = vshrl.u32 %v1375_v36, 16  ;;  %v1729_v39 = vrot.slane %v1724_v29, %v3266_v5 }
 0x154   : > { %v2601_v54 = vpop.f32.mrf.mxu1  ;;  %v2573_v27 = vpop.f32.mrf.mxu0  ;;  %4032 = vst [vmem:[#allocation46_spill] sm:$0xff] %v3459_v17  ;;  %v3482_v53 = vrot.slane %v1581_v1, 5 }
 0x155   : > { %v2426_v6 = vmul.f32 -1.442695, %v695_v42  ;;  %v3430_v54 = vld [vmem:[#allocation3 + $0x10] sm:$0x7]  ;;  %v1447_v42 = vpack.i.b16 %v1446_v62, %v1446_v62  ;;  %v1606_v13 = vrot.slane %v1601_v45, %v3239_v44  ;;  %v3450_v32 = vrot.slane %v1379_v57, 4 }
 0x156   : > { %v697_v23 = vpop.f32.mrf.mxu1  ;;  %v1685_v62 = vmul.bf16 %v3426_v10, %v3430_v54  ;;  %v1658_v10 = vpack.i.b16 %v3348_v33, %v3348_v33  ;;  %v569_v26 = vpop.f32.mrf.mxu0  ;;  %4034 = vst [vmem:[#allocation48_spill] sm:$0xff] %v3482_v53  ;;  %v1592_v16 = vrot.slane %v3482_v53, 4 }
 0x157   : > { %2757 = vpow2.f32 %v2426_v6  ;;  %v1382_v6 = vshll.u32 %v1375_v36, 16  ;;  %v1877_v23 = vld [vmem:[#allocation10 + $0xc] sm:$0x2]  ;;  %v3453_v45 = vrot.slane %v1447_v42, %v3266_v5  ;;  %v3455_v36 = vcombine.low %v1509_v35, %v1509_v35 }
 0x158   : > { %v2602_v2 = vpop.f32.mrf.mxu1  ;;  %v1706_v57 = vshll.u32 %v1685_v62, 16  ;;  %v1710_v27 = vshrl.u32 %v1685_v62, 16  ;;  %v1760_v42 = vrot.slane %v1755_v43, %v3266_v5  ;;  %v1910_v12 = vshrl.u32 %v1877_v23, 16  ;;  %v2574_v18 = vpop.f32.mrf.mxu0 }
 0x159   : > { %v3446_v2 = vrot.slane %v1310_v4, 6  ;;  %4031 = vst [vmem:[#allocation45_spill] sm:$0xff] %v3455_v36  ;;  %v3462_v4 = vcombine.low %v1606_v13, %v1606_v13  ;;  %v3468_v35 = vmul.bf16 %v3459_v17, %v1501_v58  ;;  %v1988_v13 = vrot.slane %v1983_v37, %v3236_v41 }
 0x15a   : > { %v3477_v26 = vrot.slane %v1382_v6, 5  ;;  %v1663_v62 = vrot.slane %v1658_v10, %v3236_v41  ;;  %v1879_v43 = vpack.i.b16 %v1877_v23, %v1877_v23  ;;  %v1516_v46 = vmul.bf16 %v3455_v36, %v1501_v58 }
 0x15b   : > { %4033 = vst [vmem:[#allocation47_spill] sm:$0xff] %v3462_v4  ;;  %v3471_v33 = vmul.bf16 %v3462_v4, %v1566_v55  ;;  %v1556_v17 = vshrl.u32 %v3468_v35, 16  ;;  %v1721_v55 = vld [vmem:[#allocation3 + $0x10] sm:$0xf]  ;;  %v3485_v4 = vrot.slane %v1706_v57, 5  ;;  %v1712_v37 = vrot.slane %v1710_v27, 4 }
 0x15c   : > { %v3487_v18 = vcombine.low %v1760_v42, %v1760_v42  ;;  %v1911_v22 = vpack.i.b16 %v1910_v12, %v1910_v12  ;;  %v1814_v10 = vpack.i.b16 %v3418_v47, %v3418_v47  ;;  %v3492_v23 = vcombine.low %v1834_v61, %v1834_v61  ;;  %v3501_v57 = vld [vmem:[#allocation3 + $0x10] sm:$0xf] }
 0x15d   : > { %4035 = vst [vmem:[#allocation49_spill] sm:$0xff] %v3485_v4  ;;  %v1634_v6 = vshrl.u32 %v3471_v33, 16  ;;  %v3494_v58 = vcombine.low %v1988_v13, %v1988_v13  ;;  %v3498_v36 = vcombine.low %v1663_v62, %v1663_v62  ;;  %v1884_v12 = vrot.slane %v1879_v43, %v3239_v44 }
 0x15e   : > { %4036 = vst [vmem:[#allocation50_spill] sm:$0xff] %v3487_v18  ;;  %4037 = vst [vmem:[#allocation51_spill] sm:$0xff] %v3492_v23  ;;  %v1766_v29 = vmul.bf16 %v3487_v18, %v1721_v55  ;;  %v1565_v42 = vadd.bf16 %v1556_v17, %v1516_v46  ;;  %v1840_v61 = vmul.bf16 %v3492_v23, %v3501_v57 }
 0x15f   : > { %4038 = vst [vmem:[#allocation52_spill] sm:$0xff] %v3494_v58  ;;  %4039 = vst [vmem:[#allocation53_spill] sm:$0xff] %v3498_v36  ;;  %v1713_v1 = vor.u32 %v1712_v37, %v3485_v4  ;;  %v3509_v62 = vcombine.low %v1729_v39, %v1729_v39  ;;  %v1916_v18 = vrot.slane %v1911_v22, %v3239_v44  ;;  %v3512_v14 = vrot.slane %v1634_v6, 5 }
 0x160   : > { %v1819_v43 = vrot.slane %v1814_v10, %v3234_v38  ;;  %v1856_v46 = vshrl.u32 %v1840_v61, 16  ;;  %v1994_v17 = vmul.bf16 %v3494_v58, %v3501_v57  ;;  %v1777_v47 = vshrl.u32 %v1766_v29, 16 }
 0x161   : > { %4040 = vst [vmem:[#allocation54_spill] sm:$0xff] %v3509_v62  ;;  %v1780_v53 = vshll.u32 %v1766_v29, 16  ;;  %v3519_v37 = vadd.bf16 %v1592_v16, %v1565_v42  ;;  %v1736_v39 = vmul.bf16 %v3509_v62, %v1721_v55  ;;  %v1852_v44 = vshll.u32 %v1840_v61, 16 }
 0x162   : > { %v2034_v22 = vpack.i.b16 %v2032_v3, %v2032_v3  ;;  %v1670_v6 = vmul.bf16 %v3498_v36, %v3430_v54  ;;  %v1714_v38 = vrot.slane %v1713_v1, 4  ;;  %v3524_v10 = vcombine.low %v1916_v18, %v1916_v18  ;;  %v3539_v1 = vld [vmem:[#allocation3 + $0x14] sm:$0x7] }
 0x163   : > { %v1841_v29 = vmul.bf16 %v3492_v23, %v1811_v20  ;;  %v1858_v4 = vrot.slane %v1856_v46, 4  ;;  %v2006_v30 = vshll.u32 %v1994_v17, 16  ;;  %v2010_v16 = vshrl.u32 %v1994_v17, 16  ;;  %v2403_v17 = vld [vmem:[%s3940_s3] ss:$0 sm:$0xff] }
 0x164   : > { %v2758_v27 = vpop.eup %2757  ;;  %4042 = vst [vmem:[#allocation56_spill] sm:$0xff] %v3524_v10  ;;  %v1779_v42 = vrot.slane %v1777_v47, 5  ;;  %v1782_v25 = vrot.slane %v1780_v53, 6  ;;  %v3529_v55 = vcombine.low %v1819_v43, %v1819_v43  ;;  %v3533_v54 = vrot.slane %v1736_v39, 5 }
 0x165   : > { %v729_v13 = vadd.f32 1.0, %v2758_v27  ;;  %v3517_v27 = vcombine.low %v1884_v12, %v1884_v12  ;;  %v1876_v12 = vld [vmem:[#allocation3 + $0x14] sm:$0x3]  ;;  %v3535_v18 = vrot.slane %v1852_v44, 5  ;;  %v2039_v61 = vrot.slane %v2034_v22, %v3266_v5 }
 0x166   : > { %4043 = vst [vmem:[#allocation57_spill] sm:$0xff] %v3529_v55  ;;  %4044 = vst [vmem:[#allocation58_spill] sm:$0xff] %v3533_v54  ;;  %v1720_v46 = vadd.bf16 %v1714_v38, %v1670_v6  ;;  %v1923_v53 = vmul.bf16 %v3524_v10, %v1876_v12  ;;  %v1862_v44 = vshll.u32 %v1841_v29, 16  ;;  %v3549_v23 = vrot.slane %v2006_v30, 5 }
 0x167   : > { %2759 = vrcp.f32 %v729_v13  ;;  %4041 = vst [vmem:[#allocation55_spill] sm:$0xff] %v3517_v27  ;;  %v1968_v13 = vpack.i.b16 %v3420_v21, %v3420_v21  ;;  %v1890_v3 = vmul.bf16 %v3517_v27, %v3501_v57  ;;  %4045 = vst [vmem:[#allocation59_spill] sm:$0xff] %v3535_v18  ;;  %v1922_v21 = vmul.bf16 %v3524_v10, %v3501_v57 }
 0x168   : > { %v1891_v47 = vmul.bf16 %v3517_v27, %v1876_v12  ;;  %v1859_v39 = vor.u32 %v1858_v4, %v3535_v18  ;;  %4046 = vst [vmem:[#allocation60_spill] sm:$0xff] %v3549_v23  ;;  %v2012_v62 = vrot.slane %v2010_v16, 4  ;;  %v1747_v36 = vrot.slane %v3533_v54, 4 }
 0x169   : > { %v1973_v43 = vrot.slane %v1968_v13, %v3236_v41  ;;  %v3552_v5 = vor.u32 %v1782_v25, %v1779_v42  ;;  %v3554_v22 = vrot.slane %v1890_v3, 5  ;;  %v1995_v6 = vmul.bf16 %v3494_v58, %v3539_v1 }
 0x16a   : > { %v1826_v41 = vmul.bf16 %v3529_v55, %v1811_v20  ;;  %v1934_v38 = vshrl.u32 %v1922_v21, 16  ;;  %v1937_v13 = vshll.u32 %v1922_v21, 16  ;;  %v3559_v12 = vcombine.low %v2039_v61, %v2039_v61 }
 0x16b   : > { %4047 = vst [vmem:[#allocation61_spill] sm:$0xff] %v3552_v5  ;;  %v567_v4 = vadd.f32 %v2403_v17, %v3440_v0  ;;  %v1866_v30 = vshrl.u32 %v1841_v29, 16  ;;  %v1900_v18 = vrot.slane %v1891_v47, 5  ;;  %v1944_v16 = vshrl.u32 %v1923_v53, 16  ;;  %v2031_v0 = vld [vmem:[#allocation3 + $0x14] sm:$0xf] }
 0x16c   : > { %v1860_v27 = vrot.slane %v1859_v39, 4  ;;  %v1864_v10 = vrot.slane %v1862_v44, 5  ;;  %v1947_v25 = vshll.u32 %v1923_v53, 16  ;;  %v2013_v42 = vor.u32 %v2012_v62, %v3549_v23 }
 0x16d   : > { %v1753_v3 = vadd.bf16 %v1747_v36, %v1720_v46  ;;  %v1785_v54 = vrot.slane %v3552_v5, 4  ;;  %v2016_v58 = vshll.u32 %v1995_v6, 16  ;;  %v2020_v11 = vshrl.u32 %v1995_v6, 16 }
 0x16e   : > { %v1825_v21 = vmul.bf16 %v3529_v55, %v3501_v57  ;;  %v1936_v61 = vrot.slane %v1934_v38, 5  ;;  %v1939_v51 = vrot.slane %v1937_v13, 6  ;;  %v2045_v29 = vmul.bf16 %v3559_v12, %v3501_v57 }
 0x16f   : > { %v1875_v17 = vadd.bf16 %v1866_v30, %v1826_v41  ;;  %v1902_v53 = vrot.slane %v1900_v18, 4  ;;  %v1946_v39 = vrot.slane %v1944_v16, 5  ;;  %v1865_v36 = vsel %vm3304_vm5, %v1860_v27, %v1864_v10 }
 0x170   : > { %v1899_v62 = vrot.slane %v3554_v22, 4  ;;  %v1949_v46 = vrot.slane %v1947_v25, 6  ;;  %v2014_v44 = vrot.slane %v2013_v42, 4  ;;  %v4048_v6 = vmov 0.0  }
 0x171   : > { %v2018_v55 = vrot.slane %v2016_v58, 5  ;;  %v2022_v38 = vrot.slane %v2020_v11, 4  ;;  %v2046_v13 = vmul.bf16 %v3559_v12, %v2031_v0  ;;  %v1642_v5 = vrot.slane %v3512_v14, 4 }
 0x172   : > { %v1791_v56 = vadd.bf16 %v1785_v54, %v1753_v3  ;;  %v3576_v41 = vcombine.low %v1973_v43, %v1973_v43  ;;  %v1874_v30 = vadd.bf16 %v1865_v36, %v1825_v21  ;;  %v1908_v27 = vadd.bf16 %v1902_v53, %v1875_v17 }
 0x173   : > { %v1952_v10 = vrot.slane %v1946_v39, 4  ;;  %v3578_v16 = vrot.slane %v2045_v29, 5  ;;  %v1901_v25 = vsel %vm3320_vm8, %v1899_v62, %v1900_v18  ;;  %v1950_v58 = vor.u32 %v1949_v46, %v1946_v39 }
 0x174   : > { %v2760_v20 = vpop.eup %2759  ;;  %v1979_v42 = vmul.bf16 %v3576_v41, %v3501_v57  ;;  %v2023_v54 = vor.u32 %v2022_v38, %v2018_v55  ;;  %v2055_v43 = vrot.slane %v2046_v13, 5  ;;  %v4049_v3 = vmul.bf16 %v3399_v40, %v3397_v49 }
 0x175   : > { %v747_v47 = vmul.f32 %v2760_v20, %v567_v4  ;;  %v3574_v4 = vor.u32 %v1939_v51, %v1936_v61  ;;  %v2019_v51 = vsel %vm3304_vm5, %v2014_v44, %v2018_v55  ;;  %v1552_v18 = vshll.u32 %v3468_v35, 16 }
 0x176   : > { %v3591_v20 = vrot.slane %v4049_v3, 9  ;;  %v4050_v21 = vshll.u32 %v3471_v33, 16  ;;  %v1794_v0 = vunpack.c.l.bf16 %v1791_v56  ;;  %v4051_v57 = vor.u32 %v3408_v9, %v3406_v8 }
 0x177   : > { %v2517_v23 = vpack.c.bf16 %v4048_v6, %v747_v47  ;;  %v1942_v11 = vrot.slane %v3574_v4, 4  ;;  %v3604_v55 = vadd.bf16 %v1642_v5, %v3519_v37  ;;  %v1907_v47 = vadd.bf16 %v1901_v25, %v1874_v30 }
 0x178   : > { %v3596_v61 = vrot.slane %v4050_v21, 6  ;;  %v3601_v29 = vrot.slane %v4051_v57, 4  ;;  %v3606_v17 = vadd.bf16 %v1952_v10, %v1908_v27  ;;  %v4052_v49 = vor.u32 %v3446_v2, %v3442_v28 }
 0x179   : > { %2519 = vst [vmem:[#allocation3 + $0x8] sm:$0xff] %v2517_v23   ;;  %v2054_v23 = vrot.slane %v3578_v16, 4  ;;  %v3615_v33 = vcombine.low %v3453_v45, %v3453_v45  ;;  %v1951_v56 = vsel %vm3336_vm9, %v1942_v11, %v1950_v58  ;;  %v2029_v8 = vadd.bf16 %v2019_v51, %v1979_v42 }
 0x17a   : > { %v3611_v35 = vrot.slane %v4052_v49, 4  ;;  %v4053_v9 = vor.u32 %v3477_v26, %v3450_v32  ;;  %v1980_v5 = vmul.bf16 %v3576_v41, %v3539_v1  ;;  %v2024_v53 = vrot.slane %v2023_v54, 4 }
 0x17b   : > { %v2056_v28 = vsel %vm3320_vm8, %v2054_v23, %v2055_v43  ;;  %v3630_v45 = vrot.slane %v1552_v18, 5  ;;  %v1640_v39 = vor.u32 %v3596_v61, %v3512_v14  ;;  %v3634_v36 = vrot.slane %v1794_v0, 4  ;;  %v4091_v61 = vld [vmem:[#allocation56_spill] sm:$0xff] }
 0x17c   : > { %v3622_v37 = vrot.slane %v4053_v9, 4  ;;  %v2057_v62 = vrot.slane %v2055_v43, 4  ;;  %v1651_v44 = vunpack.c.l.bf16 %v3604_v55  ;;  %v3639_v6 = vadd.bf16 %v1951_v56, %v1907_v47 }
 0x17d   : > { %v1961_v38 = vunpack.c.l.bf16 %v3606_v17  ;;  %v2062_v10 = vadd.bf16 %v2056_v28, %v2029_v8  ;;  %v2030_v58 = vadd.bf16 %v2024_v53, %v1980_v5  ;;  %v4054_v5 = vld [vmem:[#allocation27_spill] sm:$0xff] }
 0x17e   : > { %v4055_v53 = vmul.bf16 %v3275_v19, %v4054_v5 }
 0x17f   : > { %v3649_v0 = vunpack.c.l.bf16 %v2062_v10  ;;  %v2063_v9 = vadd.bf16 %v2057_v62, %v2030_v58 }
 0x180   : > { %v3628_v2 = vld [vmem:[#allocation3 + $0x8] sm:$0xf] }
 0x181   : > { %v875_v32 = vld [vmem:[#allocation3 + $0x8] sm:$0x1]  ;;  %v1149_v1 = vmul.bf16 %v3298_v50, %v3628_v2  ;;  %v1119_v50 = vmul.bf16 %v3290_v34, %v3628_v2  ;;  %v1222_v8 = vmul.bf16 %v3345_v31, %v3628_v2 }
 0x182   : > { %v943_v26 = vld [vmem:[#allocation3 + $0x8] sm:$0x3]  ;;  %v905_v13 = vmul.bf16 %v3244_v48, %v875_v32  ;;  %v890_v25 = vmul.bf16 %v3275_v19, %v875_v32  ;;  %v4056_v32 = vld [vmem:[#allocation29_spill] sm:$0xff] }
 0x183   : > { %v1038_v46 = vld [vmem:[#allocation3 + $0x8] sm:$0x7]  ;;  %v958_v30 = vmul.bf16 %v3269_v7, %v943_v26  ;;  %v993_v27 = vmul.bf16 %v3258_v59, %v943_v26  ;;  %v1160_v18 = vshrl.u32 %v1149_v1, 16  ;;  %v1128_v56 = vrot.slane %v1119_v50, 5 }
 0x184   : > { %v1068_v11 = vmul.bf16 %v3249_v52, %v1038_v46  ;;  %v929_v42 = vshll.u32 %v905_v13, 16  ;;  %v933_v51 = vshrl.u32 %v905_v13, 16  ;;  %v4057_v26 = vrot.slane %v4056_v32, 4 }
 0x185   : > { %v970_v54 = vrot.slane %v958_v30, 5  ;;  %v1017_v23 = vshrl.u32 %v993_v27, 16  ;;  %v1020_v43 = vshll.u32 %v993_v27, 16  ;;  %v4058_v30 = vld [vmem:[#allocation34_spill] sm:$0xff]  ;;  %v1162_v10 = vrot.slane %v1160_v18, 5 }
 0x186   : > { %v1089_v3 = vshll.u32 %v1068_v11, 16  ;;  %v1093_v48 = vshrl.u32 %v1068_v11, 16  ;;  %v931_v7 = vrot.slane %v929_v42, 5  ;;  %v942_v21 = vadd.bf16 %v933_v51, %v890_v25  ;;  %v4059_v11 = vld [vmem:[#allocation28_spill] sm:$0xff]  ;;  %v1193_v42 = vld [vmem:[#allocation3 + $0xc] sm:$0x1] }
 0x187   : > { %v972_v59 = vrot.slane %v970_v54, 4  ;;  %v1019_v57 = vrot.slane %v1017_v23, 5  ;;  %v1022_v47 = vrot.slane %v1020_v43, 6  ;;  %v971_v13 = vsel %vm3320_vm8, %v4057_v26, %v970_v54  ;;  %v4061_v54 = vld [vmem:[#allocation31_spill] sm:$0xff] }
 0x188   : > { %v1091_v52 = vrot.slane %v1089_v3, 5  ;;  %v1095_v49 = vrot.slane %v1093_v48, 4  ;;  %v932_v34 = vsel %vm3304_vm5, %v3360_v63, %v931_v7  ;;  %v4060_v50 = vmul.bf16 %v4059_v11, %v4054_v5 }
 0x189   : > { %v941_v28 = vadd.bf16 %v932_v34, %v4055_v53  ;;  %v1023_v63 = vor.u32 %v1022_v47, %v1019_v57  ;;  %v1163_v58 = vshll.u32 %v1149_v1, 16  ;;  %v978_v51 = vadd.bf16 %v972_v59, %v942_v21  ;;  %v4063_v1 = vld [vmem:[#allocation30_spill] sm:$0xff] }
 0x18a   : > { %v1092_v27 = vsel %vm3304_vm5, %v4058_v30, %v1091_v52  ;;  %v1096_v25 = vor.u32 %v1095_v49, %v1091_v52  ;;  %v1025_v23 = vrot.slane %v1019_v57, 4  ;;  %v1053_v43 = vmul.bf16 %v4059_v11, %v1038_v46  ;;  %v1258_v30 = vld [vmem:[#allocation3 + $0xc] sm:$0x3] }
 0x18b   : > { %v1102_v62 = vadd.bf16 %v1092_v27, %v4060_v50  ;;  %v977_v19 = vadd.bf16 %v971_v13, %v941_v28  ;;  %v4062_v48 = vrot.slane %v4061_v54, 4  ;;  %v1165_v18 = vrot.slane %v1163_v58, 6 }
 0x18c   : > { %v1097_v3 = vrot.slane %v1096_v25, 4  ;;  %v1234_v47 = vshll.u32 %v1222_v8, 16  ;;  %v1130_v52 = vrot.slane %v1128_v56, 4  ;;  %v1223_v34 = vmul.bf16 %v3345_v31, %v1193_v42  ;;  %v4065_v25 = vld [vmem:[#allocation35_spill] sm:$0xff] }
 0x18d   : > { %v1129_v7 = vsel %vm3320_vm8, %v4062_v48, %v1128_v56  ;;  %v1238_v53 = vshrl.u32 %v1222_v8, 16  ;;  %v4064_v32 = vrot.slane %v4063_v1, 4  ;;  %v1166_v46 = vor.u32 %v1165_v18, %v1162_v10  ;;  %v4069_v48 = vld [vmem:[#allocation36_spill] sm:$0xff] }
 0x18e   : > { %v1135_v49 = vadd.bf16 %v1129_v7, %v1102_v62  ;;  %v1103_v59 = vadd.bf16 %v1097_v3, %v1053_v43  ;;  %v1236_v57 = vrot.slane %v1234_v47, 5  ;;  %v3681_v26 = vadd.bf16 %v1025_v23, %v978_v51  ;;  %v4068_v43 = vld [vmem:[#allocation37_spill] sm:$0xff] }
 0x18f   : > { %v1024_v21 = vsel %vm3336_vm9, %v4064_v32, %v1023_v63  ;;  %v1240_v13 = vrot.slane %v1238_v53, 4  ;;  %v2066_v56 = vunpack.c.l.bf16 %v2063_v9  ;;  %v4066_v31 = vrot.slane %v4065_v25, 4  ;;  %v4067_v63 = vld [vmem:[#allocation32_spill] sm:$0xff] }
 0x190   : > { %v3679_v28 = vadd.bf16 %v1024_v21, %v977_v19  ;;  %v1136_v27 = vadd.bf16 %v1130_v52, %v1103_v59  ;;  %v1168_v11 = vrot.slane %v1166_v46, 4  ;;  %v1272_v50 = vmul.bf16 %v4067_v63, %v3628_v2 }
 0x191   : > { %v1167_v8 = vsel %vm3336_vm9, %v4066_v31, %v1166_v46  ;;  %v1241_v62 = vor.u32 %v1240_v13, %v1236_v57  ;;  %v1244_v58 = vshll.u32 %v1223_v34, 16  ;;  %v1248_v19 = vshrl.u32 %v1223_v34, 16  ;;  %v4071_v31 = vld [vmem:[#allocation40_spill] sm:$0xff] }
 0x192   : > { %v1173_v10 = vadd.bf16 %v1167_v8, %v1135_v49  ;;  %v1174_v51 = vadd.bf16 %v1168_v11, %v1136_v27  ;;  %v1237_v23 = vsel %vm3304_vm5, %v3601_v29, %v1236_v57  ;;  %v1273_v9 = vmul.bf16 %v4067_v63, %v1258_v30  ;;  %v4072_v11 = vld [vmem:[#allocation41_spill] sm:$0xff] }
 0x193   : > { %v1304_v3 = vmul.bf16 %v4068_v43, %v3628_v2  ;;  %v1207_v7 = vmul.bf16 %v4069_v48, %v3628_v2  ;;  %v1305_v18 = vmul.bf16 %v4068_v43, %v1258_v30  ;;  %v3698_v47 = vrot.slane %v2066_v56, 4  ;;  %v4075_v43 = vld [vmem:[#allocation39_spill] sm:$0xff] }
 0x194   : > { %v1176_v54 = vunpack.c.l.bf16 %v1173_v10  ;;  %v1208_v52 = vmul.bf16 %v4069_v48, %v1193_v42  ;;  %v1242_v49 = vrot.slane %v1241_v62, 4  ;;  %v1279_v34 = vrot.slane %v1272_v50, 5  ;;  %v1347_v42 = vld [vmem:[#allocation3 + $0xc] sm:$0x7] }
 0x195   : > { %v1282_v53 = vrot.slane %v1273_v9, 5  ;;  %v1034_v29 = vunpack.c.l.bf16 %v3681_v26  ;;  %v1177_v1 = vunpack.c.l.bf16 %v1174_v51  ;;  %v4070_v32 = vmul.bf16 %v4069_v48, %v4054_v5 }
 0x196   : > { %v1316_v59 = vshrl.u32 %v1304_v3, 16  ;;  %v1033_v46 = vunpack.c.l.bf16 %v3679_v28  ;;  %v1183_v57 = vrot.slane %v1176_v54, 4  ;;  %v1246_v13 = vrot.slane %v1244_v58, 5 }
 0x197   : > { %v1255_v21 = vadd.bf16 %v1237_v23, %v4070_v32  ;;  %v1257_v30 = vadd.bf16 %v1248_v19, %v1208_v52  ;;  %v1284_v56 = vrot.slane %v1282_v53, 4  ;;  %v1319_v27 = vshll.u32 %v1304_v3, 16  ;;  %v4073_v19 = vld [vmem:[#allocation42_spill] sm:$0xff] }
 0x198   : > { %v1326_v25 = vshrl.u32 %v1305_v18, 16  ;;  %v1361_v8 = vmul.bf16 %v4071_v31, %v3628_v2  ;;  %v1247_v26 = vsel %vm3304_vm5, %v1242_v49, %v1246_v13  ;;  %v1280_v5 = vsel %vm3320_vm8, %v4072_v11, %v1279_v34  ;;  %v3723_v13 = vld [vmem:[#allocation3 + $0xc] sm:$0xf] }
 0x199   : > { %v1281_v63 = vrot.slane %v1279_v34, 4  ;;  %v1318_v50 = vrot.slane %v1316_v59, 5  ;;  %v1185_v28 = vrot.slane %v1177_v1, 4  ;;  %v1288_v10 = vadd.bf16 %v1280_v5, %v1255_v21 }
 0x19a   : > { %v1321_v62 = vrot.slane %v1319_v27, 6  ;;  %v1328_v58 = vrot.slane %v1326_v25, 5  ;;  %v4074_v51 = vrot.slane %v4073_v19, 4  ;;  %v1329_v9 = vshll.u32 %v1305_v18, 16  ;;  %v4076_v27 = vld [vmem:[#allocation33_spill] sm:$0xff] }
 0x19b   : > { %v1376_v3 = vmul.bf16 %v4075_v43, %v3628_v2  ;;  %v1377_v54 = vmul.bf16 %v4075_v43, %v1347_v42  ;;  %v3719_v48 = vadd.bf16 %v1247_v26, %v1207_v7  ;;  %v1290_v52 = vadd.bf16 %v1284_v56, %v1257_v30 }
 0x19c   : > { %v1184_v23 = vsel %vm1181_vm10, %v4074_v51, %v1183_v57  ;;  %v1334_v49 = vrot.slane %v1328_v58, 4  ;;  %v1427_v34 = vmul.bf16 %v3399_v40, %v3628_v2  ;;  %v1322_v1 = vor.u32 %v1321_v62, %v1318_v50 }
 0x19d   : > { %v1388_v32 = vshll.u32 %v1376_v3, 16  ;;  %v1392_v21 = vshrl.u32 %v1376_v3, 16  ;;  %v1398_v59 = vshll.u32 %v1377_v54, 16  ;;  %v1186_v18 = vsel %vm1181_vm10, %v1183_v57, %v1185_v28 }
 0x19e   : > { %v4077_v25 = vunpack.c.l.bf16 %v4076_v27  ;;  %v1283_v7 = vsel %vm3320_vm8, %v1281_v63, %v1282_v53  ;;  %v1402_v30 = vshrl.u32 %v1377_v54, 16  ;;  %v3732_v56 = vadd.f32 %v1185_v28, %v1034_v29 }
 0x19f   : > { %v1331_v26 = vrot.slane %v1329_v9, 6  ;;  %v1390_v5 = vrot.slane %v1388_v32, 5  ;;  %v1394_v50 = vrot.slane %v1392_v21, 4  ;;  %v3734_v62 = vadd.bf16 %v1334_v49, %v1290_v52 }
 0x1a0   : > { %v3728_v11 = vadd.f32 %v1184_v23, %v4077_v25  ;;  %v1400_v19 = vrot.slane %v1398_v59, 5  ;;  %v1404_v51 = vrot.slane %v1402_v30, 4  ;;  %v1434_v43 = vrot.slane %v1427_v34, 5 }
 0x1a1   : > { %v1323_v57 = vsel %vm3336_vm9, %v3611_v35, %v1322_v1  ;;  %v1391_v23 = vsel %vm3304_vm5, %v3622_v37, %v1390_v5  ;;  %v1395_v53 = vor.u32 %v1394_v50, %v1390_v5  ;;  %v1428_v29 = vmul.bf16 %v3399_v40, %v3723_v13  ;;  %v4078_v37 = vld [vmem:[#allocation38_spill] sm:$0xff] }
 0x1a2   : > { %v1289_v63 = vadd.bf16 %v1283_v7, %v3719_v48  ;;  %v1324_v28 = vrot.slane %v1322_v1, 4  ;;  %v3745_v9 = vadd.bf16 %v1323_v57, %v1288_v10  ;;  %v1405_v3 = vor.u32 %v1404_v51, %v1400_v19 }
 0x1a3   : > { %v3747_v54 = vadd.f32 %v1186_v18, %v1033_v46  ;;  %v1332_v52 = vor.u32 %v1331_v26, %v1328_v58  ;;  %v1362_v49 = vmul.bf16 %v4071_v31, %v1347_v42  ;;  %v1396_v35 = vrot.slane %v1395_v53, 4  ;;  %v1517_v42 = vld [vmem:[#allocation3 + $0x8] sm:$0xe] }
 0x1a4   : > { %v1343_v34 = vunpack.c.l.bf16 %v3734_v62  ;;  %v1406_v32 = vrot.slane %v1405_v3, 4  ;;  %v4079_v21 = vmul.bf16 %v4071_v31, %v4078_v37  ;;  %v1436_v40 = vrot.slane %v1434_v43, 4 }
 0x1a5   : > { %v1401_v48 = vsel %vm3304_vm5, %v1396_v35, %v1400_v19  ;;  %v1437_v10 = vrot.slane %v1428_v29, 5  ;;  %v1457_v46 = vmul.bf16 %v3615_v33, %v3628_v2  ;;  %v1458_v58 = vmul.bf16 %v3615_v33, %v3723_v13  ;;  %v4080_v19 = vld [vmem:[#allocation46_spill] sm:$0xff] }
 0x1a6   : > { %v1410_v59 = vadd.bf16 %v1391_v23, %v4079_v21  ;;  %v1333_v1 = vsel %vm3336_vm9, %v1324_v28, %v1332_v52  ;;  %v1341_v18 = vunpack.c.l.bf16 %v3745_v9  ;;  %v1411_v27 = vadd.bf16 %v1401_v48, %v1361_v8 }
 0x1a7   : > { %v1435_v31 = vsel %vm3320_vm8, %v3591_v20, %v1434_v43  ;;  %v1412_v25 = vadd.bf16 %v1406_v32, %v1362_v49  ;;  %v1460_v7 = vshrl.u32 %v1457_v46, 16  ;;  %v1463_v30 = vshll.u32 %v1457_v46, 16  ;;  %v4081_v49 = vld [vmem:[#allocation44_spill] sm:$0xff] }
 0x1a8   : > { %v1469_v26 = vshrl.u32 %v1458_v58, 16  ;;  %v1438_v5 = vsel %vm3320_vm8, %v1436_v40, %v1437_v10  ;;  %v1443_v50 = vadd.bf16 %v1435_v31, %v1410_v59  ;;  %v1472_v33 = vshll.u32 %v1458_v58, 16  ;;  %v3773_v40 = vld [vmem:[#allocation3 + $0x8] sm:$0xc] }
 0x1a9   : > { %v1529_v51 = vmul.bf16 %v4080_v19, %v1517_v42  ;;  %v1439_v57 = vrot.slane %v1437_v10, 4  ;;  %v1462_v23 = vrot.slane %v1460_v7, 5  ;;  %v1465_v53 = vrot.slane %v1463_v30, 6 }
 0x1aa   : > { %v1471_v29 = vrot.slane %v1469_v26, 5  ;;  %v1474_v8 = vrot.slane %v1472_v33, 6  ;;  %v1530_v28 = vmul.bf16 %v4080_v19, %v3723_v13  ;;  %v1444_v9 = vadd.bf16 %v1438_v5, %v1411_v27  ;;  %v4082_v33 = vld [vmem:[#allocation47_spill] sm:$0xff] }
 0x1ab   : > { %v1533_v20 = vshrl.u32 %v1529_v51, 16  ;;  %v1536_v43 = vshll.u32 %v1529_v51, 16  ;;  %v1445_v3 = vadd.bf16 %v1439_v57, %v1412_v25  ;;  %v1466_v52 = vor.u32 %v1465_v53, %v1462_v23 }
 0x1ac   : > { %v1580_v35 = vmul.bf16 %v4081_v49, %v3723_v13  ;;  %v1475_v32 = vor.u32 %v1474_v8, %v1471_v29  ;;  %v1542_v59 = vshll.u32 %v1530_v28, 16  ;;  %v1339_v48 = vadd.bf16 %v1333_v1, %v1289_v63 }
 0x1ad   : > { %v1535_v37 = vrot.slane %v1533_v20, 4  ;;  %v1538_v21 = vrot.slane %v1536_v43, 5  ;;  %v1467_v10 = vrot.slane %v1466_v52, 4  ;;  %v1546_v46 = vshrl.u32 %v1530_v28, 16 }
 0x1ae   : > { %v1579_v58 = vmul.bf16 %v4081_v49, %v1517_v42  ;;  %v1477_v31 = vrot.slane %v1475_v32, 4  ;;  %v1481_v7 = vadd.bf16 %v1466_v52, %v1443_v50  ;;  %v1544_v27 = vrot.slane %v1542_v59, 5  ;;  %v4083_v42 = vld [vmem:[#allocation45_spill] sm:$0xff] }
 0x1af   : > { %v1539_v30 = vor.u32 %v1538_v21, %v1535_v37  ;;  %v1476_v25 = vsel %vm3336_vm9, %v1467_v10, %v1475_v32  ;;  %v1548_v26 = vrot.slane %v1546_v46, 4  ;;  %v1587_v5 = vrot.slane %v1580_v35, 5  ;;  %v1671_v46 = vld [vmem:[#allocation3 + $0x8] sm:$0x8] }
 0x1b0   : > { %v1611_v19 = vmul.bf16 %v4082_v33, %v3773_v40  ;;  %v1482_v51 = vadd.bf16 %v1476_v25, %v1444_v9  ;;  %v1483_v57 = vadd.bf16 %v1477_v31, %v1445_v3  ;;  %v1612_v63 = vmul.bf16 %v4082_v33, %v3723_v13 }
 0x1b1   : > { %v1540_v23 = vrot.slane %v1539_v30, 4  ;;  %v1342_v1 = vunpack.c.l.bf16 %v1339_v48  ;;  %v1514_v50 = vmul.bf16 %v4083_v42, %v3628_v2  ;;  %v1549_v53 = vor.u32 %v1548_v26, %v1544_v27  ;;  %v4085_v26 = vld [vmem:[#allocation53_spill] sm:$0xff] }
 0x1b2   : > { %v2468_v29 = vrot.slane %v1579_v58, 9  ;;  %v1484_v8 = vunpack.c.l.bf16 %v1481_v7  ;;  %v1485_v28 = vunpack.c.l.bf16 %v1482_v51  ;;  %v1486_v20 = vunpack.c.l.bf16 %v1483_v57  ;;  %v4086_v51 = vld [vmem:[#allocation43_spill] sm:$0xff] }
 0x1b3   : > { %v1545_v43 = vsel %vm3304_vm5, %v1540_v23, %v1544_v27  ;;  %v1550_v52 = vrot.slane %v1549_v53, 4  ;;  %v1589_v49 = vrot.slane %v1587_v5, 4  ;;  %v1615_v9 = vshrl.u32 %v1611_v19, 16 }
 0x1b4   : > { %v1618_v3 = vshll.u32 %v1611_v19, 16  ;;  %v1344_v35 = vadd.f32 %v1341_v18, %v3728_v11  ;;  %v1346_v32 = vadd.f32 %v1343_v34, %v3732_v56  ;;  %v1563_v37 = vadd.bf16 %v1545_v43, %v1514_v50  ;;  %v4084_v56 = vld [vmem:[#allocation48_spill] sm:$0xff]  ;;  %v4088_v50 = vld [vmem:[#allocation50_spill] sm:$0xff] }
 0x1b5   : > { %v1624_v2 = vshrl.u32 %v1612_v63, 16  ;;  %v1345_v21 = vadd.f32 %v1342_v1, %v3747_v54  ;;  %v1491_v59 = vrot.slane %v1485_v28, 4  ;;  %v1515_v48 = vmul.bf16 %v4083_v42, %v3723_v13 }
 0x1b6   : > { %v1627_v10 = vshll.u32 %v1612_v63, 16  ;;  %v1490_v58 = vrot.slane %v1484_v8, 4  ;;  %v1493_v31 = vrot.slane %v1486_v20, 4  ;;  %v1555_v11 = vsel %vm3304_vm5, %v1550_v52, %v3630_v45  ;;  %v4087_v63 = vld [vmem:[#allocation54_spill] sm:$0xff] }
 0x1b7   : > { %v1588_v62 = vsel %vm3320_vm8, %v2468_v29, %v1587_v5  ;;  %v1591_v34 = vsel %vm3320_vm8, %v1589_v49, %v4084_v56  ;;  %v1617_v54 = vrot.slane %v1615_v9, 5  ;;  %v1620_v18 = vrot.slane %v1618_v3, 6 }
 0x1b8   : > { %v1626_v7 = vrot.slane %v1624_v2, 5  ;;  %v1500_v30 = vadd.f32 %v1493_v31, %v1346_v32  ;;  %v3801_v27 = vadd.bf16 %v1588_v62, %v1563_v37  ;;  %v1629_v25 = vrot.slane %v1627_v10, 6 }
 0x1b9   : > { %v1668_v33 = vmul.bf16 %v4085_v26, %v3773_v40  ;;  %v1492_v19 = vsel %vm1181_vm10, %v1490_v58, %v1491_v59  ;;  %v1564_v45 = vadd.bf16 %v1555_v11, %v1515_v48  ;;  %v1683_v57 = vmul.bf16 %v4086_v51, %v1671_v46 }
 0x1ba   : > { %v1684_v5 = vmul.bf16 %v4086_v51, %v3723_v13  ;;  %v3809_v23 = vor.u32 %v1629_v25, %v1626_v7  ;;  %v1734_v1 = vmul.bf16 %v4087_v63, %v1671_v46  ;;  %v1735_v42 = vmul.bf16 %v4087_v63, %v3723_v13 }
 0x1bb   : > { %v1765_v53 = vmul.bf16 %v4088_v50, %v3723_v13  ;;  %v1687_v29 = vshrl.u32 %v1683_v57, 16  ;;  %v1690_v40 = vshll.u32 %v1683_v57, 16  ;;  %v1494_v20 = vsel %vm1181_vm10, %v1491_v59, %v1493_v31  ;;  %v1827_v31 = vld [vmem:[#allocation3 + $0xc] sm:$0xe]  ;;  %v4090_v57 = vld [vmem:[#allocation58_spill] sm:$0xff] }
 0x1bc   : > { %v1696_v8 = vshll.u32 %v1684_v5, 16  ;;  %v1700_v28 = vshrl.u32 %v1684_v5, 16  ;;  %v1621_v43 = vor.u32 %v1620_v18, %v1617_v54  ;;  %v1654_v52 = vadd.f32 %v1651_v44, %v1500_v30  ;;  %v3826_v18 = vld [vmem:[#allocation3 + $0xc] sm:$0xc]  ;;  %v4092_v5 = vld [vmem:[#allocation49_spill] sm:$0xff] }
 0x1bd   : > { %v1742_v49 = vrot.slane %v1735_v42, 5  ;;  %v1632_v9 = vrot.slane %v3809_v23, 4  ;;  %v1689_v3 = vrot.slane %v1687_v29, 4  ;;  %v1692_v32 = vrot.slane %v1690_v40, 5 }
 0x1be   : > { %v1698_v37 = vrot.slane %v1696_v8, 5  ;;  %v3820_v2 = vadd.f32 %v1492_v19, %v1344_v35  ;;  %v3822_v48 = vadd.f32 %v1494_v20, %v1345_v21  ;;  %v1702_v10 = vrot.slane %v1700_v28, 4  ;;  %v4093_v8 = vld [vmem:[#allocation55_spill] sm:$0xff] }
 0x1bf   : > { %v2473_v46 = vrot.slane %v1734_v1, 9  ;;  %v1597_v58 = vadd.bf16 %v1591_v34, %v1564_v45  ;;  %v1693_v11 = vor.u32 %v1692_v32, %v1689_v3  ;;  %v1744_v62 = vrot.slane %v1742_v49, 4  ;;  %v1981_v32 = vld [vmem:[#allocation3 + $0xc] sm:$0x8] }
 0x1c0   : > { %v1768_v59 = vshrl.u32 %v1765_v53, 16  ;;  %v1622_v56 = vrot.slane %v1621_v43, 4  ;;  %v1669_v55 = vmul.bf16 %v4085_v26, %v3723_v13  ;;  %v1703_v44 = vor.u32 %v1702_v10, %v1698_v37  ;;  %v4089_v13 = vld [vmem:[#allocation51_spill] sm:$0xff]  ;;  %v702_v43 = vpop.f32.mrf.mxu1 }
 0x1c1   : > { %v1771_v54 = vshll.u32 %v1765_v53, 16  ;;  %v1641_v35 = vsel %vm3336_vm9, %v1632_v9, %v1640_v39  ;;  %v1694_v21 = vrot.slane %v1693_v11, 4  ;;  %v1808_v7 = vadd.f32 %v3634_v36, %v1654_v52  ;;  %v574_v53 = vpop.f32.mrf.mxu0 }
 0x1c2   : > { %v1770_v34 = vrot.slane %v1768_v59, 5  ;;  %v1704_v30 = vrot.slane %v1703_v44, 4  ;;  %v1743_v25 = vsel %vm3320_vm8, %v2473_v46, %v1742_v49  ;;  %v1839_v26 = vmul.bf16 %v4089_v13, %v1827_v31  ;;  %v1809_v46 = vld [vmem:[#allocation3 + $0xc] sm:$0xf]  ;;  %v4094_v59 = vld [vmem:[#allocation61_spill] sm:$0xff] }
 0x1c3   : > { %v1773_v19 = vrot.slane %v1771_v54, 6  ;;  %v1647_v45 = vadd.bf16 %v1641_v35, %v1597_v58  ;;  %v1699_v51 = vsel %vm3304_vm5, %v1694_v21, %v1698_v37  ;;  %v1746_v14 = vsel %vm3320_vm8, %v1744_v62, %v4090_v57  ;;  %v2577_v37 = vpop.f32.mrf.mxu0  ;;  %v2605_v62 = vpop.f32.mrf.mxu1  ;;  %v4096_v13 = vld [vmem:[#allocation57_spill] sm:$0xff] }
 0x1c4   : > { %v1921_v39 = vmul.bf16 %v4091_v61, %v3826_v18  ;;  %v1709_v63 = vsel %vm3304_vm5, %v1704_v30, %v4092_v5  ;;  %v1718_v1 = vadd.bf16 %v1699_v51, %v1668_v33  ;;  %v1843_v50 = vshrl.u32 %v1839_v26, 16 }
 0x1c5   : > { %v1774_v42 = vor.u32 %v1773_v19, %v1770_v34  ;;  %v1719_v29 = vadd.bf16 %v1709_v63, %v1669_v55  ;;  %v1846_v40 = vshll.u32 %v1839_v26, 16  ;;  %v1889_v28 = vmul.bf16 %v4093_v8, %v1827_v31  ;;  %v577_v35 = vpop.f32.mrf.mxu0 }
 0x1c6   : > { %v1925_v20 = vshrl.u32 %v1921_v39, 16  ;;  %v1751_v52 = vadd.bf16 %v1743_v25, %v1718_v1  ;;  %v1845_v9 = vrot.slane %v1843_v50, 4  ;;  %v1928_v3 = vshll.u32 %v1921_v39, 16  ;;  %v705_v25 = vpop.f32.mrf.mxu1  ;;  %v4097_v50 = vld [vmem:[#allocation59_spill] sm:$0xff] }
 0x1c7   : > { %v1775_v49 = vrot.slane %v1774_v42, 4  ;;  %v1631_v10 = vsel %vm3336_vm9, %v1622_v56, %v3809_v23  ;;  %v1752_v33 = vadd.bf16 %v1746_v14, %v1719_v29  ;;  %v1848_v58 = vrot.slane %v1846_v40, 5  ;;  %v4095_v23 = vld [vmem:[#allocation52_spill] sm:$0xff]  ;;  %v2578_v14 = vpop.f32.mrf.mxu0 }
 0x1c8   : > { %v1927_v11 = vrot.slane %v1925_v20, 5  ;;  %v1789_v55 = vadd.bf16 %v1774_v42, %v1751_v52  ;;  %v1930_v44 = vrot.slane %v1928_v3, 6  ;;  %v1964_v54 = vadd.f32 %v1961_v38, %v1808_v7  ;;  %v2606_v17 = vpop.f32.mrf.mxu1 }
 0x1c9   : > { %v1784_v31 = vsel %vm3336_vm9, %v1775_v49, %v4094_v59  ;;  %v1646_v21 = vadd.bf16 %v1631_v10, %v3801_v27  ;;  %v1849_v30 = vor.u32 %v1848_v58, %v1845_v9  ;;  %v1993_v56 = vmul.bf16 %v4095_v23, %v1981_v32 }
 0x1ca   : > { %v1790_v34 = vadd.bf16 %v1784_v31, %v1752_v33  ;;  %v1650_v19 = vunpack.c.l.bf16 %v1647_v45  ;;  %v1824_v26 = vmul.bf16 %v4096_v13, %v1809_v46  ;;  %v2479_v51 = vrot.slane %v1889_v28, 9 }
 0x1cb   : > { %v1931_v57 = vor.u32 %v1930_v44, %v1927_v11  ;;  %v1850_v39 = vrot.slane %v1849_v30, 4  ;;  %v1997_v5 = vshrl.u32 %v1993_v56, 16  ;;  %v2000_v63 = vshll.u32 %v1993_v56, 16  ;;  %v4098_v11 = vld [vmem:[#allocation60_spill] sm:$0xff] }
 0x1cc   : > { %v1793_v61 = vunpack.c.l.bf16 %v1790_v34  ;;  %v1653_v38 = vadd.f32 %v1650_v19, %v3822_v48  ;;  %v1792_v7 = vunpack.c.l.bf16 %v1789_v55  ;;  %v2044_v27 = vmul.bf16 %v3559_v12, %v1981_v32 }
 0x1cd   : > { %v2080_v1 = vadd.f32 %v3698_v47, %v1964_v54  ;;  %v1855_v45 = vsel %vm3304_vm5, %v1850_v39, %v4097_v50  ;;  %v1999_v53 = vrot.slane %v1997_v5, 4  ;;  %v2002_v29 = vrot.slane %v2000_v63, 5 }
 0x1ce   : > { %v1799_v42 = vrot.slane %v1793_v61, 4  ;;  %v1873_v40 = vadd.bf16 %v1855_v45, %v1824_v26  ;;  %v1932_v8 = vrot.slane %v1931_v57, 4  ;;  %v1960_v28 = vunpack.c.l.bf16 %v3639_v6  ;;  %v2485_v6 = vld [vmem:[%s3943_s6] ss:$0 sm:$0xff] }
 0x1cf   : > { %v2071_v20 = vrot.slane %v3649_v0, 4  ;;  %v1649_v43 = vunpack.c.l.bf16 %v1646_v21  ;;  %v1898_v12 = vsel %vm3320_vm8, %v2479_v51, %v3554_v22  ;;  %v2003_v52 = vor.u32 %v2002_v29, %v1999_v53  ;;  %v2489_v45 = vld [vmem:[%s3945_s8] ss:$0 sm:$0xff] }
 0x1d0   : > { %v1802_v48 = vsel %vm1181_vm10, %v1799_v42, %v3634_v36  ;;  %v1798_v49 = vrot.slane %v1792_v7, 4  ;;  %v1906_v3 = vadd.bf16 %v1898_v12, %v1873_v40  ;;  %v2484_v10 = vrot.slane %v2044_v27, 9 }
 0x1d1   : > { %v1807_v9 = vadd.f32 %v1802_v48, %v1653_v38  ;;  %v2074_v32 = vsel %vm1181_vm10, %v2071_v20, %v3698_v47  ;;  %v1652_v0 = vadd.f32 %v1649_v43, %v3820_v2  ;;  %v2004_v37 = vrot.slane %v2003_v52, 4 }
 0x1d2   : > { %v2090_v36 = vadd.f32 %v2485_v6, %v2080_v1  ;;  %v1941_v22 = vsel %vm3336_vm9, %v1932_v8, %v3574_v4  ;;  %v1978_v46 = vmul.bf16 %v3576_v41, %v3826_v18  ;;  %v1800_v62 = vsel %vm1181_vm10, %v1798_v49, %v1799_v42 }
 0x1d3   : > { %v1963_v33 = vadd.f32 %v1960_v28, %v1807_v9  ;;  %v1956_v58 = vadd.bf16 %v1941_v22, %v1906_v3  ;;  %v2009_v47 = vsel %vm3304_vm5, %v2004_v37, %v4098_v11  ;;  %v1806_v31 = vadd.f32 %v1800_v62, %v1652_v0 }
 0x1d4   : > { %v2028_v59 = vadd.bf16 %v2009_v47, %v1978_v46  ;;  %v2053_v55 = vsel %vm3320_vm8, %v2484_v10, %v3578_v16  ;;  %v2488_v24 = vmul.f32 -1.442695, %v2090_v36 }
 0x1d5   : > { %v2079_v2 = vadd.f32 %v2074_v32, %v1963_v33  ;;  %v1959_v54 = vunpack.c.l.bf16 %v1956_v58 }
 0x1d6   : > { %v2061_v4 = vadd.bf16 %v2053_v55, %v2028_v59  ;;  %2761 = vpow2.f32 %v2488_v24 }
 0x1d7   : > { %v2089_v44 = vadd.f32 %v2485_v6, %v2079_v2  ;;  %v1962_v18 = vadd.f32 %v1959_v54, %v1806_v31 }
 0x1d8   : > { %v2064_v35 = vunpack.c.l.bf16 %v2061_v4 }
 0x1d9   : > { %v2487_v41 = vmul.f32 -1.442695, %v2089_v44 }
 0x1da   : > { %v2070_v21 = vrot.slane %v2064_v35, 4 }
 0x1db   : > { %2763 = vpow2.f32 %v2487_v41 }
 0x1dc   : > { %v2072_v60 = vsel %vm1181_vm10, %v2070_v21, %v2071_v20 }
 0x1dd   : > { %v2078_v34 = vadd.f32 %v2072_v60, %v1962_v18 }
 0x1df   : > { %v2088_v30 = vadd.f32 %v2485_v6, %v2078_v34 }
 0x1e1   : > { %v2486_v23 = vmul.f32 -1.442695, %v2088_v30 }
 0x1e3   : > { %2765 = vpow2.f32 %v2486_v23  ;;  %v2762_v56 = vpop.eup %2761 }
 0x1e4   : > { %v2102_v15 = vadd.f32 1.0, %v2762_v56 }
 0x1e6   : > { %2767 = vrcp.f32 %v2102_v15 }
 0x1e8   : > { %v2764_v25 = vpop.eup %2763 }
 0x1e9   : > { %v2101_v16 = vadd.f32 1.0, %v2764_v25 }
 0x1eb   : > { %2769 = vrcp.f32 %v2101_v16 }
 0x1f0   : > { %v2766_v19 = vpop.eup %2765 }
 0x1f1   : > { %v2100_v13 = vadd.f32 1.0, %v2766_v19 }
 0x1f3   : > { %2771 = vrcp.f32 %v2100_v13  ;;  %v2768_v26 = vpop.eup %2767 }
 0x1f4   : > { %v2111_v57 = vmul.f32 %v2768_v26, %v2090_v36 }
 0x1f6   : > { %v2113_v5 = vpack.c.bf16 %v2111_v57, %v2111_v57 }
 0x1f8   : > { %v2770_v51 = vpop.eup %2769  ;;  %v2146_v38 = vshll.u32 %v2113_v5, 16 }
 0x1f9   : > { %v2110_v14 = vmul.f32 %v2770_v51, %v2089_v44 }
 0x1fa   : > { %v2148_v42 = vrot.slane %v2146_v38, 1 }
 0x200   : > { %v2772_v61 = vpop.eup %2771 }
 0x201   : > { %v2109_v39 = vmul.f32 %v2772_v61, %v2088_v30 }
 0x203   : > { %v2112_v63 = vpack.c.bf16 %v2110_v14, %v2109_v39 }
 0x205   : > { %v2141_v17 = vshll.u32 %v2112_v63, 16  ;;  %v2139_v7 = vshrl.u32 %v2112_v63, 16 }
 0x207   : > { %v2143_v27 = vrot.slane %v2141_v17, 1 }
 0x209   : > { %v2144_v1 = vor.u32 %v2143_v27, %v2139_v7 }
 0x20b   : > { %v2149_v50 = vsel %vm2137_vm11, %v2144_v1, %v2148_v42 }
 0x20c   : > { %2624 = vmatmul.mubr.bf16.vlgmr.msra.gmra.mxu0 %v2149_v50 }
 0x2cc   : > { %v2233_v53 = vpop.f32.mrf.mxu0 }
 0x2cd   : > { %v2234_v29 = vadd.f32 %v2489_v45, %v2233_v53 }
 0x2ce   : > { %v2625_v40 = vpop.f32.mrf.mxu0 }
 0x2cf   : > { %2240 = vst [vmem:[%s3194_s16] sm:$0xff] %v2234_v29  ;;  %2249 = sbr.rel (!%p3090_p4) target bundleno = 747 (0x2eb), region = 96 }
 0x2d0   : > { %v2236_v8 = vpop.f32.mrf.mxu0 }
 0x2d1   : > { %v2237_v28 = vadd.f32 %v2489_v45, %v2236_v8 }
 0x2d2   : > { %v2626_v20 = vpop.f32.mrf.mxu0 }
 0x2d3   : > { %2241 = vst [vmem:[%s3194_s16 + $0x8] sm:$0xff] %v2237_v28 }
 0x2d4   : > { %2255 = vsyncadd %s3898_s24, 128  ;;  %s2499_s13 = sshll.u32 %s2977_s12, 7  ;;  %s2261_s15 = sshll.u32 %s3194_s16, 4  ;;  %s2262_s15 = int_to_ptr.vmem [resolvable:$true] %s2261_s15 }
 0x2d5   : > { %s2259_s27 = scalar_lea.hbm %s3946_s9, %s2499_s13  ;;  %s2899_s18 = scalar_lea.vmem %s2262_s15, 128 }
 0x2d6   : > { %p2900_p3 = scmp.ne.s32.totalorder %s2262_s15, %s2899_s18  ;;  %s2997_s20 = smov [#allocation13]  }
 0x2d7   : > { %s2901_s26 = sshll.u32 %s2997_s20, 4  ;;  %s2902_s26 = int_to_ptr.vmem [resolvable:$false] %s2901_s26 }
 0x2d8   : > { %s2903_s25 = scalar_lea.vmem %s2902_s26, 512  ;;  %p2904_p5 = scmp.lt.s32.totalorder %s2262_s15, %s2902_s26 }
 0x2d9   : > { %p2905_p10 = scmp.lt.s32.totalorder %s2903_s25, %s2899_s18 }
 0x2db   : > { %p2906_p4 = por %p2905_p10, %p2904_p5 }
 0x2dd   : > { %p2907_p11 = pnand %p2906_p4, %p2900_p3 }
 0x2df   : > { %2910 = shalt.err (!%p2907_p11)
}
 0x2e0   : > { %s2911_s19 = scalar_lea.hbm %s2259_s27, 128  ;;  %s2913_s29 = scalar_lea.hbm %s3946_s9, 256 }
 0x2e1   : > { %p2912_p13 = scmp.ne.s32.totalorder %s2259_s27, %s2911_s19  ;;  %p2914_p0 = scmp.lt.s32.totalorder %s2259_s27, %s3946_s9 }
 0x2e2   : > { %p2915_p6 = scmp.lt.s32.totalorder %s2913_s29, %s2911_s19 }
 0x2e4   : > { %p2916_p7 = por %p2915_p6, %p2914_p0 }
 0x2e6   : > { %p2917_p9 = pnand %p2916_p7, %p2912_p13 }
 0x2e8   : > { %2920 = shalt.err (!%p2917_p9)
}
 0x2e9   : > { %s2998_s13 = smov 128   ;;  %s2999_s23 = smov 8  }
 0x2ea   : > { %2267 = dma.vmem_to_hbm [thread:$0]  %s2262_s15, 128, %s2259_s27, %s3898_s24, %s2998_s13, %s2998_s13, %s2999_s23  }
 0x2eb PF: > { %p2669_p12 = scmp.ge.s32.totalorder %s2985_s14, 2  ;;  %s2276_s17 = sand.u32 1, %s2965_s30  }
 0x2ec   : > { %s2277_s18 = scalar_lea.sflag [#allocation7], %s2276_s17 }
 0x2ed   : > { %p2658_p2 = pnand %p2669_p12, %p3097_p8 }
 0x2ef   : > { %p2659_p1 = pneg %p2658_p2 }
 0x2f1   : > { %2960 = dma.done.wait (%p2659_p1), %s2277_s18, 256  }
 0x2f2   : > { %2962 = vsyncadd (%p2659_p1), %s2277_s18, 4294967040  ;;  %s25_s14 = sadd.s32 1, %s2985_s14   ;;  %s4100_s12 = sld [smem:[#allocation25_spill]] }
 0x2f3   : > { %p22_p3 = scmp.ge.s32.totalorder %s25_s14, 4   ;;  %s4101_s13 = sld [smem:[#allocation26_spill]] }
 0x2f4   : > { %s4102_s30 = smov %s2969_s10  ;;  %s4103_s10 = smov %s2973_s11 }
 0x2f5   : > { %s4104_s11 = smov %s3103_s22  ;;  %24 = sbr.rel (!%p22_p3) target bundleno = 9 (0x9), region = 132 }
 0x2fa   :  { %2282 = vsyncpa [#allocation6], 1 }
 0x2fb   :  { %2284 = vsyncpa [#allocation6 + $0x1], 1 }
 0x2fc   :  { %2285 = vsyncpa [#allocation9], 1 }
 0x2fd   :  { %2286 = vsyncpa [#allocation12], 1 }
 0x2fe   :  { %2287 = vsyncpa [#allocation7], 1 }
 0x2ff   :  { %2289 = vsyncpa [#allocation7 + $0x1], 1 }
 0x300   :  { %2290 = vsyncmov [#allocation4] }
 0x303   :  { %s2291_s21 = vpop.sfrf %2290 }
 0x304   :  { %p2502_p8 = scmp.ne.s32.totalorder %s2291_s21, 0 }
 0x306   :  { %2295 = shalt.err (%p2502_p8)  }
 0x307   :  { %2297 = vsyncmov [#allocation4 + $0x1] }
 0x30a   :  { %s2298_s24 = vpop.sfrf %2297 }
 0x30b   :  { %p2503_p5 = scmp.ne.s32.totalorder %s2298_s24, 0 }
 0x30d   :  { %2302 = shalt.err (%p2503_p5)  }

</bundles_post_ra>
